<compile_context>
chip_gen: v7x
topology: tpu7x:2x2x1
jax: 0.10.0
libtpu: 0.0.40
codegen_flags: <defaults>
</compile_context>

<pallas_src>
import jax
import jax.numpy as jnp
from jax import lax
from jax.experimental import pallas as pl
from jax.experimental.pallas import tpu as pltpu

# bf16 operands: ~2x MXU rate on v6e/v7x, avoids f32 multi-pass emulation on v5e.
MXU_DTYPE = jnp.bfloat16
_NEG = -1e30  # -inf substitute for padded log_softmax class lanes


def _acc_dots(lhs_list, rhs_list):
  out = jnp.dot(lhs_list[0], rhs_list[0], preferred_element_type=jnp.float32)
  for lhs, rhs in zip(lhs_list[1:], rhs_list[1:]):
    out = out + jnp.dot(lhs, rhs, preferred_element_type=jnp.float32)
  return out


def lenet_kernel(x_ref, w1p_ref, b1_ref, w2p_ref, b2_ref,
                 wfc1_ref, bfc1_ref, wfc2_ref, bfc2_ref, out_ref):
  BB = x_ref.shape[1]
  # Cast the input block ONCE to the MXU operand dtype (no per-window re-casts).
  xv = x_ref[...].astype(MXU_DTYPE)                        # (28, BB, 28) [h, b, w]

  # ---- conv1 (5x5, 1->10): even & odd output-x fused into one 256-lane RHS ----
  xs = [xv[ky:ky + 24].reshape(24 * BB, 28) for ky in range(5)]
  c1 = _acc_dots(xs, [w1p_ref[ky] for ky in range(5)])     # (24*BB, 256) f32
  c1e = c1[:, :120].reshape(12, 2, BB, 120)                # lane-aligned slices
  c1o = c1[:, 128:248].reshape(12, 2, BB, 120)
  m1 = jnp.maximum(jnp.maximum(c1e[:, 0], c1e[:, 1]),
                   jnp.maximum(c1o[:, 0], c1o[:, 1]))      # 2x2 max-pool
  p1 = jnp.maximum(m1 + b1_ref[...], 0.0)                  # (12, BB, 120) f32 VPU math
  p1m = p1.astype(MXU_DTYPE)                               # single cast for conv2

  # ---- conv2 (5x5, 10->20); Dropout2d == identity (eval) ----
  ps = [p1m[ky:ky + 8].reshape(8 * BB, 120) for ky in range(5)]
  c2 = _acc_dots(ps, [w2p_ref[ky] for ky in range(5)])     # (8*BB, 256) f32
  c2e = c2[:, :80].reshape(4, 2, BB, 80)
  c2o = c2[:, 128:208].reshape(4, 2, BB, 80)
  m2 = jnp.maximum(jnp.maximum(c2e[:, 0], c2e[:, 1]),
                   jnp.maximum(c2o[:, 0], c2o[:, 1]))
  p2 = jnp.maximum(m2 + b2_ref[...], 0.0)                  # (4, BB, 80) f32
  p2m = p2.astype(MXU_DTYPE)

  # ---- fc1 (320->50): contract over (h, w*20+c), batch on the M dim ----
  h1 = _acc_dots([p2m[h] for h in range(4)],
                 [wfc1_ref[h] for h in range(4)])          # (BB, 50) f32
  h1 = jnp.maximum(h1 + bfc1_ref[...], 0.0)                # F.dropout == identity (eval)

  # ---- fc2 (50->10, zero-padded to 128 classes) + log_softmax ----
  # Padded class columns carry a -1e30 bias, so they contribute 0 to the softmax sum
  # and the (BB, 128) store is lane-dense (no masked vst in the epilogue).
  h2 = jnp.dot(h1.astype(MXU_DTYPE), wfc2_ref[...],
               preferred_element_type=jnp.float32) + bfc2_ref[...]   # (BB, 128)
  z = h2 - jnp.max(h2, axis=-1, keepdims=True)
  out_ref[...] = z - jnp.log(jnp.sum(jnp.exp(z), axis=-1, keepdims=True))


# ------------------------- host-side weight preparation -------------------------

def _band_conv1(w1, offsets):
  """Banded conv1 weights: [ky] (28, 120) with out-col = px*10 + co, px at `offsets`."""
  w1_k = jnp.transpose(w1[:, 0], (1, 2, 0))                # (ky, kx, co)
  w = jnp.arange(28)[:, None]
  kx = w - offsets[None, :]                                # (28, 12)
  valid = (kx >= 0) & (kx <= 4)
  band = w1_k[:, jnp.clip(kx, 0, 4), :]                    # (5, 28, 12, 10)
  band = band * valid[None, :, :, None]
  return band.reshape(5, 28, 120)


def _band_conv2(w2, offsets):
  """Banded conv2 weights: [ky] (120, 80): row = px*10+ci, col = px2*20+co."""
  w2_k = jnp.transpose(w2, (2, 3, 1, 0))                   # (ky, kx, ci, co)
  px = jnp.arange(12)[:, None]
  kx = px - offsets[None, :]                               # (12, 4)
  valid = (kx >= 0) & (kx <= 4)
  band = w2_k[:, jnp.clip(kx, 0, 4), :, :]                 # (5, 12, 4, 10, 20)
  band = band * valid[None, :, :, None, None]
  band = jnp.transpose(band, (0, 1, 3, 2, 4))              # (ky, px, ci, px2, co)
  return band.reshape(5, 120, 80)


def _pack_even_odd(even, odd, width):
  """Pack even/odd banded weights into one 256-lane RHS (odd half starts at lane 128)."""
  k, rows, _ = even.shape
  packed = jnp.zeros((k, rows, 256), jnp.float32)
  packed = packed.at[:, :, :width].set(even)
  packed = packed.at[:, :, 128:128 + width].set(odd)
  return packed


def mymodel_forward(x_nchw, params, block_batch=64):
  w1, b1, w2, b2, fw1, fb1, fw2, fb2 = params
  B = x_nchw.shape[0]
  # Block-batch: multiple of 8, capped so the grid has >=2 steps whenever B allows it
  # (keeps both v7x TensorCores busy and overlaps the next block's input DMA).
  BB = min(block_batch, max(8, -(-((B + 1) // 2) // 8) * 8))
  BB = max(8, (BB // 8) * 8)
  Bp = -(-B // BB) * BB

  # NCHW -> [H, batch, W] so the batch rides on the sublane / MXU-M dim.
  x = jnp.transpose(x_nchw[:, 0].astype(jnp.float32), (1, 0, 2))   # (28, B, 28)
  if Bp != B:
    x = jnp.pad(x, ((0, 0), (0, Bp - B), (0, 0)))

  cast = lambda a: a.astype(MXU_DTYPE)
  ev12, od12 = 2 * jnp.arange(12), 2 * jnp.arange(12) + 1
  ev4, od4 = 2 * jnp.arange(4), 2 * jnp.arange(4) + 1
  w1p = cast(_pack_even_odd(_band_conv1(w1, ev12), _band_conv1(w1, od12), 120))
  w2p = cast(_pack_even_odd(_band_conv2(w2, ev4), _band_conv2(w2, od4), 80))
  # fc1: PyTorch flat index co*16 + h*4 + w  ->  [h] (w*20+co, o)
  wfc1 = cast(jnp.transpose(fw1.reshape(50, 20, 4, 4), (2, 3, 1, 0)).reshape(4, 80, 50))
  wfc2 = cast(jnp.zeros((50, 128), jnp.float32).at[:, :10].set(fw2.T))
  b1t = jnp.tile(b1, 12).reshape(1, 120).astype(jnp.float32)
  b2t = jnp.tile(b2, 4).reshape(1, 80).astype(jnp.float32)
  fb1r = fb1.reshape(1, 50).astype(jnp.float32)
  fb2r = jnp.full((1, 128), _NEG, jnp.float32).at[0, :10].set(fb2)

  def const(nd):
    return lambda g: (0,) * nd

  in_specs = [
      pl.BlockSpec((28, BB, 28), lambda g: (0, g, 0)),
      pl.BlockSpec((5, 28, 256), const(3)),
      pl.BlockSpec((1, 120), const(2)),
      pl.BlockSpec((5, 120, 256), const(3)),
      pl.BlockSpec((1, 80), const(2)),
      pl.BlockSpec((4, 80, 50), const(3)),
      pl.BlockSpec((1, 50), const(2)),
      pl.BlockSpec((50, 128), const(2)),
      pl.BlockSpec((1, 128), const(2)),
  ]

  out = pl.pallas_call(
      lenet_kernel,
      out_shape=jax.ShapeDtypeStruct((Bp, 128), jnp.float32),
      grid=(Bp // BB,),
      in_specs=in_specs,
      out_specs=pl.BlockSpec((BB, 128), lambda g: (g, 0)),
      compiler_params=pltpu.CompilerParams(
          dimension_semantics=("parallel",),
          # Safe on all gens: well under v5e/v6e 128 MiB and leaves headroom on v7x 64 MiB.
          vmem_limit_bytes=48 << 20),
  )(x, w1p, b1t, w2p, b2t, wfc1, fb1r, wfc2, fb2r)
  return out[:B, :10]


def ref_forward(x, params):
  """Pure-JAX reference with PyTorch (NCHW / eval-mode) semantics."""
  w1, b1, w2, b2, fw1, fb1, fw2, fb2 = params
  dn = ("NCHW", "OIHW", "NCHW")
  y = lax.conv_general_dilated(x, w1, (1, 1), "VALID", dimension_numbers=dn)
  y = y + b1[None, :, None, None]
  y = lax.reduce_window(y, -jnp.inf, lax.max, (1, 1, 2, 2), (1, 1, 2, 2), "VALID")
  y = jnp.maximum(y, 0.0)
  y = lax.conv_general_dilated(y, w2, (1, 1), "VALID", dimension_numbers=dn)
  y = y + b2[None, :, None, None]
  y = lax.reduce_window(y, -jnp.inf, lax.max, (1, 1, 2, 2), (1, 1, 2, 2), "VALID")
  y = jnp.maximum(y, 0.0)
  y = jnp.reshape(y, (y.shape[0], -1))            # (B, 320), channel-major like .view(-1, 320)
  y = jnp.maximum(y @ fw1.T + fb1, 0.0)
  y = y @ fw2.T + fb2
  return jax.nn.log_softmax(y, axis=-1)


if __name__ == "__main__":
  key = jax.random.PRNGKey(0)
  ks = jax.random.split(key, 9)
  w1 = 0.2 * jax.random.normal(ks[0], (10, 1, 5, 5), jnp.float32)
  b1 = 0.1 * jax.random.normal(ks[1], (10,), jnp.float32)
  w2 = 0.1 * jax.random.normal(ks[2], (20, 10, 5, 5), jnp.float32)
  b2 = 0.1 * jax.random.normal(ks[3], (20,), jnp.float32)
  fw1 = 0.05 * jax.random.normal(ks[4], (50, 320), jnp.float32)
  fb1 = 0.1 * jax.random.normal(ks[5], (50,), jnp.float32)
  fw2 = 0.1 * jax.random.normal(ks[6], (10, 50), jnp.float32)
  fb2 = 0.1 * jax.random.normal(ks[7], (10,), jnp.float32)
  params = (w1, b1, w2, b2, fw1, fb1, fw2, fb2)

  x = jax.random.normal(ks[8], (2, 1, 28, 28), jnp.float32)   # batch=2, MNIST-sized input

  out = jax.block_until_ready(mymodel_forward(x, params))
  assert out.shape == (2, 10)

  ref = jax.block_until_ready(ref_forward(x, params))
  if not bool(jnp.allclose(out, ref, atol=5e-2, rtol=5e-2)):
    raise AssertionError("Pallas kernel output does not match JAX reference")

  print("KERNEL_OK")
</pallas_src>

<mosaic_0001>
module attributes {stable_mosaic.version = 11 : i64} {
  func.func @lenet_kernel(%arg0: i32, %arg1: memref<28x8x28xf32, #tpu.memory_space<vmem>>, %arg2: memref<5x28x256xbf16, #tpu.memory_space<vmem>>, %arg3: memref<1x120xf32, #tpu.memory_space<vmem>>, %arg4: memref<5x120x256xbf16, #tpu.memory_space<vmem>>, %arg5: memref<1x80xf32, #tpu.memory_space<vmem>>, %arg6: memref<4x80x50xbf16, #tpu.memory_space<vmem>>, %arg7: memref<1x50xf32, #tpu.memory_space<vmem>>, %arg8: memref<50x128xbf16, #tpu.memory_space<vmem>>, %arg9: memref<1x128xf32, #tpu.memory_space<vmem>>, %arg10: memref<8x128xf32, #tpu.memory_space<vmem>>) attributes {dimension_semantics = [#tpu.dimension_semantics<parallel>], iteration_bounds = array<i64: 1>, scalar_prefetch = 0 : i64, scratch_operands = 0 : i64, tpu.core_type = #tpu.core_type<tc>, window_params = [{transform_indices = @transform_0, window_bounds = array<i64: 28, 8, 28>}, {pipeline_mode = #tpu.pipeline_mode<synchronous>, transform_indices = @transform_1, window_bounds = array<i64: 5, 28, 256>}, {pipeline_mode = #tpu.pipeline_mode<synchronous>, transform_indices = @transform_2, window_bounds = array<i64: 1, 120>}, {pipeline_mode = #tpu.pipeline_mode<synchronous>, transform_indices = @transform_3, window_bounds = array<i64: 5, 120, 256>}, {pipeline_mode = #tpu.pipeline_mode<synchronous>, transform_indices = @transform_4, window_bounds = array<i64: 1, 80>}, {pipeline_mode = #tpu.pipeline_mode<synchronous>, transform_indices = @transform_5, window_bounds = array<i64: 4, 80, 50>}, {pipeline_mode = #tpu.pipeline_mode<synchronous>, transform_indices = @transform_6, window_bounds = array<i64: 1, 50>}, {pipeline_mode = #tpu.pipeline_mode<synchronous>, transform_indices = @transform_7, window_bounds = array<i64: 50, 128>}, {pipeline_mode = #tpu.pipeline_mode<synchronous>, transform_indices = @transform_8, window_bounds = array<i64: 1, 128>}, {transform_indices = @transform_9, window_bounds = array<i64: 8, 128>}]} {
    %c0 = arith.constant 0 : index
    %c0_0 = arith.constant 0 : index
    %c0_1 = arith.constant 0 : index
    %0 = vector.load %arg1[%c0, %c0_0, %c0_1] : memref<28x8x28xf32, #tpu.memory_space<vmem>>, vector<28x8x28xf32>
    %1 = arith.truncf %0 : vector<28x8x28xf32> to vector<28x8x28xbf16>
    %2 = vector.extract_strided_slice %1 {offsets = [0, 0, 0], sizes = [24, 8, 28], strides = [1, 1, 1]} : vector<28x8x28xbf16> to vector<24x8x28xbf16>
    %3 = vector.shape_cast %2 : vector<24x8x28xbf16> to vector<192x28xbf16>
    %4 = vector.extract_strided_slice %1 {offsets = [1, 0, 0], sizes = [24, 8, 28], strides = [1, 1, 1]} : vector<28x8x28xbf16> to vector<24x8x28xbf16>
    %5 = vector.shape_cast %4 : vector<24x8x28xbf16> to vector<192x28xbf16>
    %6 = vector.extract_strided_slice %1 {offsets = [2, 0, 0], sizes = [24, 8, 28], strides = [1, 1, 1]} : vector<28x8x28xbf16> to vector<24x8x28xbf16>
    %7 = vector.shape_cast %6 : vector<24x8x28xbf16> to vector<192x28xbf16>
    %8 = vector.extract_strided_slice %1 {offsets = [3, 0, 0], sizes = [24, 8, 28], strides = [1, 1, 1]} : vector<28x8x28xbf16> to vector<24x8x28xbf16>
    %9 = vector.shape_cast %8 : vector<24x8x28xbf16> to vector<192x28xbf16>
    %10 = vector.extract_strided_slice %1 {offsets = [4, 0, 0], sizes = [24, 8, 28], strides = [1, 1, 1]} : vector<28x8x28xbf16> to vector<24x8x28xbf16>
    %11 = vector.shape_cast %10 : vector<24x8x28xbf16> to vector<192x28xbf16>
    %c0_2 = arith.constant 0 : index
    %c0_3 = arith.constant 0 : index
    %c0_4 = arith.constant 0 : index
    %12 = vector.load %arg2[%c0_2, %c0_3, %c0_4] : memref<5x28x256xbf16, #tpu.memory_space<vmem>>, vector<1x28x256xbf16>
    %13 = vector.shape_cast %12 : vector<1x28x256xbf16> to vector<28x256xbf16>
    %c1 = arith.constant 1 : index
    %c0_5 = arith.constant 0 : index
    %c0_6 = arith.constant 0 : index
    %14 = vector.load %arg2[%c1, %c0_5, %c0_6] : memref<5x28x256xbf16, #tpu.memory_space<vmem>>, vector<1x28x256xbf16>
    %15 = vector.shape_cast %14 : vector<1x28x256xbf16> to vector<28x256xbf16>
    %c2 = arith.constant 2 : index
    %c0_7 = arith.constant 0 : index
    %c0_8 = arith.constant 0 : index
    %16 = vector.load %arg2[%c2, %c0_7, %c0_8] : memref<5x28x256xbf16, #tpu.memory_space<vmem>>, vector<1x28x256xbf16>
    %17 = vector.shape_cast %16 : vector<1x28x256xbf16> to vector<28x256xbf16>
    %c3 = arith.constant 3 : index
    %c0_9 = arith.constant 0 : index
    %c0_10 = arith.constant 0 : index
    %18 = vector.load %arg2[%c3, %c0_9, %c0_10] : memref<5x28x256xbf16, #tpu.memory_space<vmem>>, vector<1x28x256xbf16>
    %19 = vector.shape_cast %18 : vector<1x28x256xbf16> to vector<28x256xbf16>
    %c4 = arith.constant 4 : index
    %c0_11 = arith.constant 0 : index
    %c0_12 = arith.constant 0 : index
    %20 = vector.load %arg2[%c4, %c0_11, %c0_12] : memref<5x28x256xbf16, #tpu.memory_space<vmem>>, vector<1x28x256xbf16>
    %21 = vector.shape_cast %20 : vector<1x28x256xbf16> to vector<28x256xbf16>
    %cst = arith.constant dense<0.000000e+00> : vector<192x256xf32>
    %22 = tpu.matmul %3, %13, %cst {dimension_numbers = #tpu.dot_dimension_numbers<[1], [0], [0], [1], [0, 0, 1, 1], [], []>} : vector<192x28xbf16>, vector<28x256xbf16>, vector<192x256xf32> -> vector<192x256xf32>
    %cst_13 = arith.constant dense<0.000000e+00> : vector<192x256xf32>
    %23 = tpu.matmul %5, %15, %cst_13 {dimension_numbers = #tpu.dot_dimension_numbers<[1], [0], [0], [1], [0, 0, 1, 1], [], []>} : vector<192x28xbf16>, vector<28x256xbf16>, vector<192x256xf32> -> vector<192x256xf32>
    %24 = arith.addf %22, %23 : vector<192x256xf32>
    %cst_14 = arith.constant dense<0.000000e+00> : vector<192x256xf32>
    %25 = tpu.matmul %7, %17, %cst_14 {dimension_numbers = #tpu.dot_dimension_numbers<[1], [0], [0], [1], [0, 0, 1, 1], [], []>} : vector<192x28xbf16>, vector<28x256xbf16>, vector<192x256xf32> -> vector<192x256xf32>
    %26 = arith.addf %24, %25 : vector<192x256xf32>
    %cst_15 = arith.constant dense<0.000000e+00> : vector<192x256xf32>
    %27 = tpu.matmul %9, %19, %cst_15 {dimension_numbers = #tpu.dot_dimension_numbers<[1], [0], [0], [1], [0, 0, 1, 1], [], []>} : vector<192x28xbf16>, vector<28x256xbf16>, vector<192x256xf32> -> vector<192x256xf32>
    %28 = arith.addf %26, %27 : vector<192x256xf32>
    %cst_16 = arith.constant dense<0.000000e+00> : vector<192x256xf32>
    %29 = tpu.matmul %11, %21, %cst_16 {dimension_numbers = #tpu.dot_dimension_numbers<[1], [0], [0], [1], [0, 0, 1, 1], [], []>} : vector<192x28xbf16>, vector<28x256xbf16>, vector<192x256xf32> -> vector<192x256xf32>
    %30 = arith.addf %28, %29 : vector<192x256xf32>
    %31 = vector.extract_strided_slice %30 {offsets = [0, 0], sizes = [192, 120], strides = [1, 1]} : vector<192x256xf32> to vector<192x120xf32>
    %32 = vector.shape_cast %31 : vector<192x120xf32> to vector<12x2x8x120xf32>
    %33 = vector.extract_strided_slice %30 {offsets = [0, 128], sizes = [192, 120], strides = [1, 1]} : vector<192x256xf32> to vector<192x120xf32>
    %34 = vector.shape_cast %33 : vector<192x120xf32> to vector<12x2x8x120xf32>
    %35 = vector.extract_strided_slice %32 {offsets = [0, 0, 0, 0], sizes = [12, 1, 8, 120], strides = [1, 1, 1, 1]} : vector<12x2x8x120xf32> to vector<12x1x8x120xf32>
    %36 = vector.shape_cast %35 : vector<12x1x8x120xf32> to vector<12x8x120xf32>
    %37 = vector.extract_strided_slice %32 {offsets = [0, 1, 0, 0], sizes = [12, 1, 8, 120], strides = [1, 1, 1, 1]} : vector<12x2x8x120xf32> to vector<12x1x8x120xf32>
    %38 = vector.shape_cast %37 : vector<12x1x8x120xf32> to vector<12x8x120xf32>
    %39 = arith.maximumf %36, %38 : vector<12x8x120xf32>
    %40 = vector.extract_strided_slice %34 {offsets = [0, 0, 0, 0], sizes = [12, 1, 8, 120], strides = [1, 1, 1, 1]} : vector<12x2x8x120xf32> to vector<12x1x8x120xf32>
    %41 = vector.shape_cast %40 : vector<12x1x8x120xf32> to vector<12x8x120xf32>
    %42 = vector.extract_strided_slice %34 {offsets = [0, 1, 0, 0], sizes = [12, 1, 8, 120], strides = [1, 1, 1, 1]} : vector<12x2x8x120xf32> to vector<12x1x8x120xf32>
    %43 = vector.shape_cast %42 : vector<12x1x8x120xf32> to vector<12x8x120xf32>
    %44 = arith.maximumf %41, %43 : vector<12x8x120xf32>
    %45 = arith.maximumf %39, %44 : vector<12x8x120xf32>
    %c0_17 = arith.constant 0 : index
    %c0_18 = arith.constant 0 : index
    %46 = vector.load %arg3[%c0_17, %c0_18] : memref<1x120xf32, #tpu.memory_space<vmem>>, vector<1x120xf32>
    %47 = vector.shape_cast %46 : vector<1x120xf32> to vector<1x1x120xf32>
    %48 = vector.broadcast %47 : vector<1x1x120xf32> to vector<12x8x120xf32>
    %49 = arith.addf %45, %48 : vector<12x8x120xf32>
    %cst_19 = arith.constant 0.000000e+00 : f32
    %50 = vector.broadcast %cst_19 : f32 to vector<12x8x120xf32>
    %51 = arith.maximumf %49, %50 : vector<12x8x120xf32>
    %52 = arith.truncf %51 : vector<12x8x120xf32> to vector<12x8x120xbf16>
    %53 = vector.extract_strided_slice %52 {offsets = [0, 0, 0], sizes = [8, 8, 120], strides = [1, 1, 1]} : vector<12x8x120xbf16> to vector<8x8x120xbf16>
    %54 = vector.shape_cast %53 : vector<8x8x120xbf16> to vector<64x120xbf16>
    %55 = vector.extract_strided_slice %52 {offsets = [1, 0, 0], sizes = [8, 8, 120], strides = [1, 1, 1]} : vector<12x8x120xbf16> to vector<8x8x120xbf16>
    %56 = vector.shape_cast %55 : vector<8x8x120xbf16> to vector<64x120xbf16>
    %57 = vector.extract_strided_slice %52 {offsets = [2, 0, 0], sizes = [8, 8, 120], strides = [1, 1, 1]} : vector<12x8x120xbf16> to vector<8x8x120xbf16>
    %58 = vector.shape_cast %57 : vector<8x8x120xbf16> to vector<64x120xbf16>
    %59 = vector.extract_strided_slice %52 {offsets = [3, 0, 0], sizes = [8, 8, 120], strides = [1, 1, 1]} : vector<12x8x120xbf16> to vector<8x8x120xbf16>
    %60 = vector.shape_cast %59 : vector<8x8x120xbf16> to vector<64x120xbf16>
    %61 = vector.extract_strided_slice %52 {offsets = [4, 0, 0], sizes = [8, 8, 120], strides = [1, 1, 1]} : vector<12x8x120xbf16> to vector<8x8x120xbf16>
    %62 = vector.shape_cast %61 : vector<8x8x120xbf16> to vector<64x120xbf16>
    %c0_20 = arith.constant 0 : index
    %c0_21 = arith.constant 0 : index
    %c0_22 = arith.constant 0 : index
    %63 = vector.load %arg4[%c0_20, %c0_21, %c0_22] : memref<5x120x256xbf16, #tpu.memory_space<vmem>>, vector<1x120x256xbf16>
    %64 = vector.shape_cast %63 : vector<1x120x256xbf16> to vector<120x256xbf16>
    %c1_23 = arith.constant 1 : index
    %c0_24 = arith.constant 0 : index
    %c0_25 = arith.constant 0 : index
    %65 = vector.load %arg4[%c1_23, %c0_24, %c0_25] : memref<5x120x256xbf16, #tpu.memory_space<vmem>>, vector<1x120x256xbf16>
    %66 = vector.shape_cast %65 : vector<1x120x256xbf16> to vector<120x256xbf16>
    %c2_26 = arith.constant 2 : index
    %c0_27 = arith.constant 0 : index
    %c0_28 = arith.constant 0 : index
    %67 = vector.load %arg4[%c2_26, %c0_27, %c0_28] : memref<5x120x256xbf16, #tpu.memory_space<vmem>>, vector<1x120x256xbf16>
    %68 = vector.shape_cast %67 : vector<1x120x256xbf16> to vector<120x256xbf16>
    %c3_29 = arith.constant 3 : index
    %c0_30 = arith.constant 0 : index
    %c0_31 = arith.constant 0 : index
    %69 = vector.load %arg4[%c3_29, %c0_30, %c0_31] : memref<5x120x256xbf16, #tpu.memory_space<vmem>>, vector<1x120x256xbf16>
    %70 = vector.shape_cast %69 : vector<1x120x256xbf16> to vector<120x256xbf16>
    %c4_32 = arith.constant 4 : index
    %c0_33 = arith.constant 0 : index
    %c0_34 = arith.constant 0 : index
    %71 = vector.load %arg4[%c4_32, %c0_33, %c0_34] : memref<5x120x256xbf16, #tpu.memory_space<vmem>>, vector<1x120x256xbf16>
    %72 = vector.shape_cast %71 : vector<1x120x256xbf16> to vector<120x256xbf16>
    %cst_35 = arith.constant dense<0.000000e+00> : vector<64x256xf32>
    %73 = tpu.matmul %54, %64, %cst_35 {dimension_numbers = #tpu.dot_dimension_numbers<[1], [0], [0], [1], [0, 0, 1, 1], [], []>} : vector<64x120xbf16>, vector<120x256xbf16>, vector<64x256xf32> -> vector<64x256xf32>
    %cst_36 = arith.constant dense<0.000000e+00> : vector<64x256xf32>
    %74 = tpu.matmul %56, %66, %cst_36 {dimension_numbers = #tpu.dot_dimension_numbers<[1], [0], [0], [1], [0, 0, 1, 1], [], []>} : vector<64x120xbf16>, vector<120x256xbf16>, vector<64x256xf32> -> vector<64x256xf32>
    %75 = arith.addf %73, %74 : vector<64x256xf32>
    %cst_37 = arith.constant dense<0.000000e+00> : vector<64x256xf32>
    %76 = tpu.matmul %58, %68, %cst_37 {dimension_numbers = #tpu.dot_dimension_numbers<[1], [0], [0], [1], [0, 0, 1, 1], [], []>} : vector<64x120xbf16>, vector<120x256xbf16>, vector<64x256xf32> -> vector<64x256xf32>
    %77 = arith.addf %75, %76 : vector<64x256xf32>
    %cst_38 = arith.constant dense<0.000000e+00> : vector<64x256xf32>
    %78 = tpu.matmul %60, %70, %cst_38 {dimension_numbers = #tpu.dot_dimension_numbers<[1], [0], [0], [1], [0, 0, 1, 1], [], []>} : vector<64x120xbf16>, vector<120x256xbf16>, vector<64x256xf32> -> vector<64x256xf32>
    %79 = arith.addf %77, %78 : vector<64x256xf32>
    %cst_39 = arith.constant dense<0.000000e+00> : vector<64x256xf32>
    %80 = tpu.matmul %62, %72, %cst_39 {dimension_numbers = #tpu.dot_dimension_numbers<[1], [0], [0], [1], [0, 0, 1, 1], [], []>} : vector<64x120xbf16>, vector<120x256xbf16>, vector<64x256xf32> -> vector<64x256xf32>
    %81 = arith.addf %79, %80 : vector<64x256xf32>
    %82 = vector.extract_strided_slice %81 {offsets = [0, 0], sizes = [64, 80], strides = [1, 1]} : vector<64x256xf32> to vector<64x80xf32>
    %83 = vector.shape_cast %82 : vector<64x80xf32> to vector<4x2x8x80xf32>
    %84 = vector.extract_strided_slice %81 {offsets = [0, 128], sizes = [64, 80], strides = [1, 1]} : vector<64x256xf32> to vector<64x80xf32>
    %85 = vector.shape_cast %84 : vector<64x80xf32> to vector<4x2x8x80xf32>
    %86 = vector.extract_strided_slice %83 {offsets = [0, 0, 0, 0], sizes = [4, 1, 8, 80], strides = [1, 1, 1, 1]} : vector<4x2x8x80xf32> to vector<4x1x8x80xf32>
    %87 = vector.shape_cast %86 : vector<4x1x8x80xf32> to vector<4x8x80xf32>
    %88 = vector.extract_strided_slice %83 {offsets = [0, 1, 0, 0], sizes = [4, 1, 8, 80], strides = [1, 1, 1, 1]} : vector<4x2x8x80xf32> to vector<4x1x8x80xf32>
    %89 = vector.shape_cast %88 : vector<4x1x8x80xf32> to vector<4x8x80xf32>
    %90 = arith.maximumf %87, %89 : vector<4x8x80xf32>
    %91 = vector.extract_strided_slice %85 {offsets = [0, 0, 0, 0], sizes = [4, 1, 8, 80], strides = [1, 1, 1, 1]} : vector<4x2x8x80xf32> to vector<4x1x8x80xf32>
    %92 = vector.shape_cast %91 : vector<4x1x8x80xf32> to vector<4x8x80xf32>
    %93 = vector.extract_strided_slice %85 {offsets = [0, 1, 0, 0], sizes = [4, 1, 8, 80], strides = [1, 1, 1, 1]} : vector<4x2x8x80xf32> to vector<4x1x8x80xf32>
    %94 = vector.shape_cast %93 : vector<4x1x8x80xf32> to vector<4x8x80xf32>
    %95 = arith.maximumf %92, %94 : vector<4x8x80xf32>
    %96 = arith.maximumf %90, %95 : vector<4x8x80xf32>
    %c0_40 = arith.constant 0 : index
    %c0_41 = arith.constant 0 : index
    %97 = vector.load %arg5[%c0_40, %c0_41] : memref<1x80xf32, #tpu.memory_space<vmem>>, vector<1x80xf32>
    %98 = vector.shape_cast %97 : vector<1x80xf32> to vector<1x1x80xf32>
    %99 = vector.broadcast %98 : vector<1x1x80xf32> to vector<4x8x80xf32>
    %100 = arith.addf %96, %99 : vector<4x8x80xf32>
    %cst_42 = arith.constant 0.000000e+00 : f32
    %101 = vector.broadcast %cst_42 : f32 to vector<4x8x80xf32>
    %102 = arith.maximumf %100, %101 : vector<4x8x80xf32>
    %103 = arith.truncf %102 : vector<4x8x80xf32> to vector<4x8x80xbf16>
    %104 = vector.extract_strided_slice %103 {offsets = [0, 0, 0], sizes = [1, 8, 80], strides = [1, 1, 1]} : vector<4x8x80xbf16> to vector<1x8x80xbf16>
    %105 = vector.shape_cast %104 : vector<1x8x80xbf16> to vector<8x80xbf16>
    %106 = vector.extract_strided_slice %103 {offsets = [1, 0, 0], sizes = [1, 8, 80], strides = [1, 1, 1]} : vector<4x8x80xbf16> to vector<1x8x80xbf16>
    %107 = vector.shape_cast %106 : vector<1x8x80xbf16> to vector<8x80xbf16>
    %108 = vector.extract_strided_slice %103 {offsets = [2, 0, 0], sizes = [1, 8, 80], strides = [1, 1, 1]} : vector<4x8x80xbf16> to vector<1x8x80xbf16>
    %109 = vector.shape_cast %108 : vector<1x8x80xbf16> to vector<8x80xbf16>
    %110 = vector.extract_strided_slice %103 {offsets = [3, 0, 0], sizes = [1, 8, 80], strides = [1, 1, 1]} : vector<4x8x80xbf16> to vector<1x8x80xbf16>
    %111 = vector.shape_cast %110 : vector<1x8x80xbf16> to vector<8x80xbf16>
    %c0_43 = arith.constant 0 : index
    %c0_44 = arith.constant 0 : index
    %c0_45 = arith.constant 0 : index
    %112 = vector.load %arg6[%c0_43, %c0_44, %c0_45] : memref<4x80x50xbf16, #tpu.memory_space<vmem>>, vector<1x80x50xbf16>
    %113 = vector.shape_cast %112 : vector<1x80x50xbf16> to vector<80x50xbf16>
    %c1_46 = arith.constant 1 : index
    %c0_47 = arith.constant 0 : index
    %c0_48 = arith.constant 0 : index
    %114 = vector.load %arg6[%c1_46, %c0_47, %c0_48] : memref<4x80x50xbf16, #tpu.memory_space<vmem>>, vector<1x80x50xbf16>
    %115 = vector.shape_cast %114 : vector<1x80x50xbf16> to vector<80x50xbf16>
    %c2_49 = arith.constant 2 : index
    %c0_50 = arith.constant 0 : index
    %c0_51 = arith.constant 0 : index
    %116 = vector.load %arg6[%c2_49, %c0_50, %c0_51] : memref<4x80x50xbf16, #tpu.memory_space<vmem>>, vector<1x80x50xbf16>
    %117 = vector.shape_cast %116 : vector<1x80x50xbf16> to vector<80x50xbf16>
    %c3_52 = arith.constant 3 : index
    %c0_53 = arith.constant 0 : index
    %c0_54 = arith.constant 0 : index
    %118 = vector.load %arg6[%c3_52, %c0_53, %c0_54] : memref<4x80x50xbf16, #tpu.memory_space<vmem>>, vector<1x80x50xbf16>
    %119 = vector.shape_cast %118 : vector<1x80x50xbf16> to vector<80x50xbf16>
    %cst_55 = arith.constant dense<0.000000e+00> : vector<8x50xf32>
    %120 = tpu.matmul %105, %113, %cst_55 {dimension_numbers = #tpu.dot_dimension_numbers<[1], [0], [0], [1], [0, 0, 1, 1], [], []>} : vector<8x80xbf16>, vector<80x50xbf16>, vector<8x50xf32> -> vector<8x50xf32>
    %cst_56 = arith.constant dense<0.000000e+00> : vector<8x50xf32>
    %121 = tpu.matmul %107, %115, %cst_56 {dimension_numbers = #tpu.dot_dimension_numbers<[1], [0], [0], [1], [0, 0, 1, 1], [], []>} : vector<8x80xbf16>, vector<80x50xbf16>, vector<8x50xf32> -> vector<8x50xf32>
    %122 = arith.addf %120, %121 : vector<8x50xf32>
    %cst_57 = arith.constant dense<0.000000e+00> : vector<8x50xf32>
    %123 = tpu.matmul %109, %117, %cst_57 {dimension_numbers = #tpu.dot_dimension_numbers<[1], [0], [0], [1], [0, 0, 1, 1], [], []>} : vector<8x80xbf16>, vector<80x50xbf16>, vector<8x50xf32> -> vector<8x50xf32>
    %124 = arith.addf %122, %123 : vector<8x50xf32>
    %cst_58 = arith.constant dense<0.000000e+00> : vector<8x50xf32>
    %125 = tpu.matmul %111, %119, %cst_58 {dimension_numbers = #tpu.dot_dimension_numbers<[1], [0], [0], [1], [0, 0, 1, 1], [], []>} : vector<8x80xbf16>, vector<80x50xbf16>, vector<8x50xf32> -> vector<8x50xf32>
    %126 = arith.addf %124, %125 : vector<8x50xf32>
    %c0_59 = arith.constant 0 : index
    %c0_60 = arith.constant 0 : index
    %127 = vector.load %arg7[%c0_59, %c0_60] : memref<1x50xf32, #tpu.memory_space<vmem>>, vector<1x50xf32>
    %128 = vector.broadcast %127 : vector<1x50xf32> to vector<8x50xf32>
    %129 = arith.addf %126, %128 : vector<8x50xf32>
    %cst_61 = arith.constant 0.000000e+00 : f32
    %130 = vector.broadcast %cst_61 : f32 to vector<8x50xf32>
    %131 = arith.maximumf %129, %130 : vector<8x50xf32>
    %132 = arith.truncf %131 : vector<8x50xf32> to vector<8x50xbf16>
    %c0_62 = arith.constant 0 : index
    %c0_63 = arith.constant 0 : index
    %133 = vector.load %arg8[%c0_62, %c0_63] : memref<50x128xbf16, #tpu.memory_space<vmem>>, vector<50x128xbf16>
    %cst_64 = arith.constant dense<0.000000e+00> : vector<8x128xf32>
    %134 = tpu.matmul %132, %133, %cst_64 {dimension_numbers = #tpu.dot_dimension_numbers<[1], [0], [0], [1], [0, 0, 1, 1], [], []>} : vector<8x50xbf16>, vector<50x128xbf16>, vector<8x128xf32> -> vector<8x128xf32>
    %c0_65 = arith.constant 0 : index
    %c0_66 = arith.constant 0 : index
    %135 = vector.load %arg9[%c0_65, %c0_66] : memref<1x128xf32, #tpu.memory_space<vmem>>, vector<1x128xf32>
    %136 = vector.broadcast %135 : vector<1x128xf32> to vector<8x128xf32>
    %137 = arith.addf %134, %136 : vector<8x128xf32>
    %cst_67 = arith.constant dense<0xFF800000> : vector<8xf32>
    %138 = vector.multi_reduction <maximumf>, %137, %cst_67 [1] : vector<8x128xf32> to vector<8xf32>
    %139 = vector.shape_cast %138 : vector<8xf32> to vector<8x1xf32>
    %140 = vector.broadcast %139 : vector<8x1xf32> to vector<8x128xf32>
    %141 = arith.subf %137, %140 : vector<8x128xf32>
    %142 = math.exp %141 : vector<8x128xf32>
    %cst_68 = arith.constant dense<0.000000e+00> : vector<8xf32>
    %143 = vector.multi_reduction <add>, %142, %cst_68 [1] : vector<8x128xf32> to vector<8xf32>
    %144 = vector.shape_cast %143 : vector<8xf32> to vector<8x1xf32>
    %145 = math.log %144 : vector<8x1xf32>
    %146 = vector.broadcast %145 : vector<8x1xf32> to vector<8x128xf32>
    %147 = arith.subf %141, %146 : vector<8x128xf32>
    %c0_69 = arith.constant 0 : index
    %c0_70 = arith.constant 0 : index
    %148 = vector.load %arg10[%c0_69, %c0_70] : memref<8x128xf32, #tpu.memory_space<vmem>>, vector<8x128xf32>
    tpu.vector_store %arg10[%c0_69, %c0_70], %147 {strides = array<i32>} : memref<8x128xf32, #tpu.memory_space<vmem>>, vector<8x128xf32>,
    return
  }
  func.func @transform_0(%arg0: i32) -> (i32, i32, i32) {
    %c0_i32 = arith.constant 0 : i32
    %c0_i32_0 = arith.constant 0 : i32
    %c0_i32_1 = arith.constant 0 : i32
    return %c0_i32, %arg0, %c0_i32_0 : i32, i32, i32
  }
  func.func @transform_1(%arg0: i32) -> (i32, i32, i32) {
    %c0_i32 = arith.constant 0 : i32
    %c0_i32_0 = arith.constant 0 : i32
    %c0_i32_1 = arith.constant 0 : i32
    %c0_i32_2 = arith.constant 0 : i32
    return %c0_i32, %c0_i32_0, %c0_i32_1 : i32, i32, i32
  }
  func.func @transform_2(%arg0: i32) -> (i32, i32) {
    %c0_i32 = arith.constant 0 : i32
    %c0_i32_0 = arith.constant 0 : i32
    %c0_i32_1 = arith.constant 0 : i32
    return %c0_i32, %c0_i32_0 : i32, i32
  }
  func.func @transform_3(%arg0: i32) -> (i32, i32, i32) {
    %c0_i32 = arith.constant 0 : i32
    %c0_i32_0 = arith.constant 0 : i32
    %c0_i32_1 = arith.constant 0 : i32
    %c0_i32_2 = arith.constant 0 : i32
    return %c0_i32, %c0_i32_0, %c0_i32_1 : i32, i32, i32
  }
  func.func @transform_4(%arg0: i32) -> (i32, i32) {
    %c0_i32 = arith.constant 0 : i32
    %c0_i32_0 = arith.constant 0 : i32
    %c0_i32_1 = arith.constant 0 : i32
    return %c0_i32, %c0_i32_0 : i32, i32
  }
  func.func @transform_5(%arg0: i32) -> (i32, i32, i32) {
    %c0_i32 = arith.constant 0 : i32
    %c0_i32_0 = arith.constant 0 : i32
    %c0_i32_1 = arith.constant 0 : i32
    %c0_i32_2 = arith.constant 0 : i32
    return %c0_i32, %c0_i32_0, %c0_i32_1 : i32, i32, i32
  }
  func.func @transform_6(%arg0: i32) -> (i32, i32) {
    %c0_i32 = arith.constant 0 : i32
    %c0_i32_0 = arith.constant 0 : i32
    %c0_i32_1 = arith.constant 0 : i32
    return %c0_i32, %c0_i32_0 : i32, i32
  }
  func.func @transform_7(%arg0: i32) -> (i32, i32) {
    %c0_i32 = arith.constant 0 : i32
    %c0_i32_0 = arith.constant 0 : i32
    %c0_i32_1 = arith.constant 0 : i32
    return %c0_i32, %c0_i32_0 : i32, i32
  }
  func.func @transform_8(%arg0: i32) -> (i32, i32) {
    %c0_i32 = arith.constant 0 : i32
    %c0_i32_0 = arith.constant 0 : i32
    %c0_i32_1 = arith.constant 0 : i32
    return %c0_i32, %c0_i32_0 : i32, i32
  }
  func.func @transform_9(%arg0: i32) -> (i32, i32) {
    %c0_i32 = arith.constant 0 : i32
    %c0_i32_0 = arith.constant 0 : i32
    return %arg0, %c0_i32 : i32, i32
  }
}

</mosaic_0001>

<bundles_post_ra>
// kernel: tpu_custom_call.1
= control target key start
LH: loop header
LB: loop body
LE: loop exit
PB: predicated region body
PF: predicated region fallthrough
CT: control target
= control target key end

     0   :  { %14 = vsyncpa [#allocation3], 0  ;;  %s4636_s0 = inlined_call_operand.vmem [shape: f32[28,8,28], index: 0, kind: input, shape index: {}]   ;;  %s4637_s1 = inlined_call_operand.hbm [shape: bf16[5,28,256], index: 1, kind: input, shape index: {}]   ;;  %s4638_s2 = inlined_call_operand.vmem [shape: f32[1,120], index: 2, kind: input, shape index: {}]   ;;  %s4639_s3 = inlined_call_operand.hbm [shape: bf16[5,120,256], index: 3, kind: input, shape index: {}]   ;;  %s4640_s4 = inlined_call_operand.vmem [shape: f32[1,80], index: 4, kind: input, shape index: {}]   ;;  %s4641_s5 = inlined_call_operand.vmem [shape: bf16[4,80,50], index: 5, kind: input, shape index: {}]   ;;  %s4642_s6 = inlined_call_operand.vmem [shape: f32[1,50], index: 6, kind: input, shape index: {}]   ;;  %s4643_s7 = inlined_call_operand.vmem [shape: bf16[50,128], index: 7, kind: input, shape index: {}]   ;;  %s4644_s8 = inlined_call_operand.vmem [shape: f32[1,128], index: 8, kind: input, shape index: {}]   ;;  %s4645_s9 = inlined_call_operand.hbm [shape: f32[8,128], index: 9, kind: output, shape index: {}]  }
   0x1   :  { %15 = vsyncpa [#allocation6], 0 }
   0x2   :  { %16 = vsyncpa [#allocation4], 0  ;;  %s3807_s30 = smov [#allocation2]   ;;  %s3735_s13 = scalar_lea.hbm %s4637_s1, 2560 }
   0x3   :  { %s24_s10 = sshll.u32 %s3807_s30, 4  ;;  %p3736_p0 = scmp.ne.s32.totalorder %s4637_s1, %s3735_s13  ;;  %s25_s10 = int_to_ptr.vmem [resolvable:$true] %s24_s10 }
   0x4   :  { %p3739_p1 = scmp.lt.u32.totalorder %s3735_s13, %s4637_s1 }
   0x6   :  { %p3741_p2 = pnand %p3739_p1, %p3736_p0 }
   0x8   :  { %3744 = shalt.err (!%p3741_p2)
}
   0x9   :  { %s3745_s18 = scalar_lea.vmem %s25_s10, 2560  ;;  %p3750_p4 = scmp.lt.s32.totalorder %s25_s10, %s25_s10 }
   0xa   :  { %p3746_p3 = scmp.ne.s32.totalorder %s25_s10, %s3745_s18  ;;  %p3751_p5 = scmp.lt.s32.totalorder %s3745_s18, %s3745_s18 }
   0xc   :  { %p3752_p6 = por %p3751_p5, %p3750_p4 }
   0xe   :  { %p3753_p7 = pnand %p3752_p6, %p3746_p3 }
  0x10   :  { %3756 = shalt.err (!%p3753_p7)
}
  0x11   :  { %s3808_s19 = smov 128   ;;  %s3809_s20 = smov 8  }
  0x12   :  { %30 = dma.hbm_to_vmem [thread:$0]  %s4637_s1, 2560, %s25_s10, [#allocation3], %s3808_s19, %s3808_s19, %s3809_s20  }
  0x13   :  { %s3810_s23 = smov [#allocation5]   ;;  %s3757_s27 = scalar_lea.hbm %s4639_s3, 9600 }
  0x14   :  { %s38_s24 = sshll.u32 %s3810_s23, 4  ;;  %p3758_p8 = scmp.ne.s32.totalorder %s4639_s3, %s3757_s27  ;;  %s39_s24 = int_to_ptr.vmem [resolvable:$true] %s38_s24 }
  0x15   :  { %p3761_p9 = scmp.lt.u32.totalorder %s3757_s27, %s4639_s3 }
  0x17   :  { %p3763_p10 = pnand %p3761_p9, %p3758_p8 }
  0x19   :  { %3766 = shalt.err (!%p3763_p10)
}
  0x1a   :  { %s3767_s12 = scalar_lea.vmem %s39_s24, 9600  ;;  %p3772_p12 = scmp.lt.s32.totalorder %s39_s24, %s39_s24 }
  0x1b   :  { %p3768_p11 = scmp.ne.s32.totalorder %s39_s24, %s3767_s12  ;;  %p3773_p13 = scmp.lt.s32.totalorder %s3767_s12, %s3767_s12 }
  0x1d   :  { %p3774_p0 = por %p3773_p13, %p3772_p12 }
  0x1f   :  { %p3775_p1 = pnand %p3774_p0, %p3768_p11 }
  0x21   :  { %3778 = shalt.err (!%p3775_p1)
}
  0x22   :  { %44 = dma.hbm_to_vmem [thread:$0]  %s4639_s3, 9600, %s39_s24, [#allocation6], %s3808_s19, %s3808_s19, %s3809_s20  }
  0x23   :  { %3801 = dma.done.wait [#allocation3], 2560  }
  0x24   :  { %3802 = vsyncadd [#allocation3], 4294964736 }
  0x25   :  { %3803 = dma.done.wait [#allocation6], 9600  }
  0x26   :  { %3804 = vsyncadd [#allocation6], 4294957696  ;;  %v4646_v0 = vmov 0   ;;  %v3562_v1 = vld [vmem:[#allocation2 + $0x4] ss:$8 sps:$4 sm:$0xff]   ;;  %vm257_vm0 = vcmask 1045504  }
  0x27   :  { %523 = vmatprep.mubr.bf16.mxu0 %v4646_v0  ;;  %296 = vmatprep.mubr.bf16.mxu1 %v4646_v0  ;;  %v3564_v2 = vld [vmem:[#allocation2] ss:$8 sps:$4 sm:$0xff]   ;;  %v3565_v3 = vld [vmem:[#allocation2 + $0x14] ss:$8 sps:$4 sm:$0x3f]   ;;  %vm220_vm1 = vcmask 228352  }
  0x28   :  { %491 = vmatprep.subr.bf16.mxu0 %v3562_v1  ;;  %v3567_v4 = vld [vmem:[#allocation2 + $0x10] ss:$8 sps:$4 sm:$0x3f]   ;;  %v62_v5 = vld [vmem:[%s4636_s0] sm:$0xff]  ;;  %v3897_v6 = vld [vmem:[%s4636_s0 + $0x8] sm:$0xff]  ;;  %vm1603_vm2 = vcmask 1043456  }
  0x29   :  { %492 = vmatpush1.bf16.msra.mxu0 %v3564_v2  ;;  %v486_v7 = vsel %vm257_vm0, %v3567_v4, 0  ;;  %v3570_v8 = vld [vmem:[#allocation2 + $0x44] ss:$8 sps:$4 sm:$0xff]   ;;  %v65_v9 = vld [vmem:[%s4636_s0 + $0x18] sm:$0xff]  ;;  %v3175_v11 = vpack.c.bf16 %v3897_v6, %v62_v5  ;;  %v3568_v13 = vld [vmem:[#allocation2 + $0x40] ss:$8 sps:$4 sm:$0xff]  }
  0x2a   :  { %2917 = vmatprep.subr.msk.bf16.mxu0 %vm257_vm0, %v3565_v3  ;;  %v66_v10 = vld [vmem:[%s4636_s0 + $0x20] sm:$0xff]  ;;  %v3571_v14 = vld [vmem:[#allocation2 + $0x54] ss:$8 sps:$4 sm:$0x3f]   ;;  %v3923_v20 = vld [vmem:[%s4636_s0 + $0x28] sm:$0xff]  ;;  %vm1590_vm3 = vcmask 982016  }
  0x2b   :  { %v3908_v12 = vpack.c.bf16 %v66_v10, %v65_v9  ;;  %v3573_v15 = vld [vmem:[#allocation2 + $0x50] ss:$8 sps:$4 sm:$0x3f]   ;;  %v3576_v19 = vld [vmem:[#allocation2 + $0x64] ss:$8 sps:$4 sm:$0xff]   ;;  %v3928_v21 = vpack.c.bf16 %v3923_v20, %v66_v10  ;;  %vm3813_vm4 = vmmov 0  }
  0x2c   :  { %v3915_v16 = vld [vmem:[%s4636_s0 + $0x10] sm:$0xff]  ;;  %v669_v17 = vsel %vm257_vm0, %v3573_v15, 0  ;;  %v3940_v23 = vld [vmem:[%s4636_s0 + $0x38] sm:$0xff]  ;;  %v3950_v25 = vld [vmem:[%s4636_s0 + $0x40] sm:$0xff]  ;;  %vm2487_vm5 = vcmask 654336   ;;  %vm2801_vm6 = vcmask 1040384  }
  0x2d   :  { %494 = vmatpush1.bf16.msra.mxu0 %v486_v7  ;;  %v3176_v18 = vpack.c.bf16 %v65_v9, %v3915_v16  ;;  %v3935_v22 = vld [vmem:[%s4636_s0 + $0x30] sm:$0xff]  ;;  %v3955_v26 = vld [vmem:[%s4636_s0 + $0x48] sm:$0xff]  ;;  %v3972_v29 = vld [vmem:[%s4636_s0 + $0x58] sm:$0xff]  ;;  %v3163_v59 = vpack.c.bf16 %v3915_v16, %v3897_v6  ;;  %v3166_v63 = vpack.c.bf16 %v3950_v25, %v3940_v23  ;;  %vm2797_vm7 = vcmask 408576  }
  0x2e   :  { %674 = vmatprep.subr.bf16.mxu0 %v3570_v8  ;;  %v3945_v24 = vpack.c.bf16 %v3940_v23, %v3935_v22  ;;  %v3962_v27 = vpack.c.bf16 %v3955_v26, %v3950_v25  ;;  %v3967_v28 = vld [vmem:[%s4636_s0 + $0x50] sm:$0xff]  ;;  %v3984_v31 = vld [vmem:[%s4636_s0 + $0x60] sm:$0xff]  ;;  %v3989_v32 = vld [vmem:[%s4636_s0 + $0x68] sm:$0xff]  ;;  %v3165_v60 = vpack.c.bf16 %v3935_v22, %v3923_v20 }
  0x2f   :  { %v3979_v30 = vpack.c.bf16 %v3972_v29, %v3967_v28  ;;  %v3996_v33 = vpack.c.bf16 %v3989_v32, %v3984_v31  ;;  %v4004_v34 = vld [vmem:[%s4636_s0 + $0x70] sm:$0xff]  ;;  %v4009_v35 = vld [vmem:[%s4636_s0 + $0x78] sm:$0xff]  ;;  %v4021_v37 = vld [vmem:[%s4636_s0 + $0x80] sm:$0xff]  ;;  %v3167_v2 = vpack.c.bf16 %v3967_v28, %v3955_v26  ;;  %v3168_v7 = vpack.c.bf16 %v3984_v31, %v3972_v29 }
  0x30   :  { %2918 = vmatmul.mubr.msk.bf16.vlgmr.msra.gmra.mrb[0].mxu0 %vm220_vm1, %v3175_v11  ;;  %v4013_v36 = vpack.c.bf16 %v4009_v35, %v4004_v34  ;;  %v4026_v38 = vld [vmem:[%s4636_s0 + $0x88] sm:$0xff]  ;;  %v4038_v40 = vld [vmem:[%s4636_s0 + $0x90] sm:$0xff]  ;;  %v4043_v41 = vld [vmem:[%s4636_s0 + $0x98] sm:$0xff]  ;;  %v3169_v8 = vpack.c.bf16 %v4004_v34, %v3989_v32  ;;  %v3170_v9 = vpack.c.bf16 %v4021_v37, %v4009_v35 }
  0x31   :  { %675 = vmatpush1.bf16.msra.mxu0 %v3568_v13  ;;  %533 = vmatprep.mubr.bf16.mxu0 %v4646_v0  ;;  %v4030_v39 = vpack.c.bf16 %v4026_v38, %v4021_v37  ;;  %v4047_v42 = vpack.c.bf16 %v4043_v41, %v4038_v40  ;;  %v4055_v43 = vld [vmem:[%s4636_s0 + $0xa0] sm:$0xff]  ;;  %v4060_v44 = vld [vmem:[%s4636_s0 + $0xa8] sm:$0xff]  ;;  %v4072_v46 = vld [vmem:[%s4636_s0 + $0xb0] sm:$0xff]  ;;  %v3171_v10 = vpack.c.bf16 %v4038_v40, %v4026_v38 }
  0x32   :  { %2935 = vmatprep.subr.msk.bf16.mxu0 %vm257_vm0, %v3571_v14  ;;  %v4064_v45 = vpack.c.bf16 %v4060_v44, %v4055_v43  ;;  %v4077_v47 = vld [vmem:[%s4636_s0 + $0xb8] sm:$0xff]  ;;  %v3574_v49 = vld [vmem:[#allocation2 + $0x60] ss:$8 sps:$4 sm:$0xff]   ;;  %v3582_v53 = vld [vmem:[#allocation2 + $0x84] ss:$8 sps:$4 sm:$0xff]   ;;  %v3172_v11 = vpack.c.bf16 %v4055_v43, %v4043_v41 }
  0x33   :  { %v4081_v48 = vpack.c.bf16 %v4077_v47, %v4072_v46  ;;  %v3577_v50 = vld [vmem:[#allocation2 + $0x74] ss:$8 sps:$4 sm:$0x3f]   ;;  %v3579_v51 = vld [vmem:[#allocation2 + $0x70] ss:$8 sps:$4 sm:$0x3f]  }
  0x34   :  { %v900_v52 = vsel %vm257_vm0, %v3579_v51, 0  ;;  %v3586_v54 = vld [vmem:[#allocation2 + $0x24] ss:$8 sps:$4 sm:$0xff]   ;;  %v3588_v55 = vld [vmem:[#allocation2 + $0x20] ss:$8 sps:$4 sm:$0xff]   ;;  %v88_v23 = vld [vmem:[%s4636_s0 + $0xd0] sm:$0xff] }
  0x35   :  { %677 = vmatpush1.bf16.msra.mxu0 %v669_v17  ;;  %264 = vmatprep.subr.bf16.mxu1 %v3586_v54  ;;  %v3589_v56 = vld [vmem:[#allocation2 + $0x34] ss:$8 sps:$4 sm:$0x3f]   ;;  %v3591_v57 = vld [vmem:[#allocation2 + $0x30] ss:$8 sps:$4 sm:$0x3f]  }
  0x36   :  { %905 = vmatprep.subr.bf16.mxu0 %v3576_v19  ;;  %265 = vmatpush1.bf16.msra.mxu1 %v3588_v55  ;;  %v259_v58 = vsel %vm257_vm0, %v3591_v57, 0  ;;  %v86_v61 = vld [vmem:[%s4636_s0 + $0xc0] sm:$0xff]  ;;  %v4139_v62 = vld [vmem:[%s4636_s0 + $0xc8] sm:$0xff]  ;;  %v3583_v4 = vld [vmem:[#allocation2 + $0x94] ss:$8 sps:$4 sm:$0x3f]  }
  0x37   :  { %2888 = vmatprep.subr.msk.bf16.mxu1 %vm257_vm0, %v3589_v56  ;;  %v4144_v1 = vpack.c.bf16 %v4139_v62, %v86_v61  ;;  %v3580_v3 = vld [vmem:[#allocation2 + $0x80] ss:$8 sps:$4 sm:$0xff]   ;;  %v3585_v5 = vld [vmem:[#allocation2 + $0x90] ss:$8 sps:$4 sm:$0x3f]   ;;  %v3174_v13 = vpack.c.bf16 %v86_v61, %v4077_v47  ;;  %v3188_v25 = vpack.c.bf16 %v88_v23, %v4139_v62 }
  0x38   :  { %2919 = vmatmul.mubr.msk.bf16.gmra.mrb[4].mxu0 %vm220_vm1, %v3176_v18  ;;  %v1131_v6 = vsel %vm257_vm0, %v3585_v5, 0  ;;  %v3592_v14 = vld [vmem:[#allocation5 + $0x78] ss:$8 sps:$4 sm:$0xff]   ;;  %v3594_v15 = vld [vmem:[#allocation5 + $0x7c] ss:$8 sps:$4 sm:$0xff]  }
  0x39   :  { %543 = vmatprep.mubr.bf16.mxu0 %v4646_v0  ;;  %v3597_v16 = vld [vmem:[#allocation5 + $0x8c] ss:$8 sps:$4 sm:$0xff]   ;;  %v3595_v17 = vld [vmem:[#allocation5 + $0x88] ss:$8 sps:$4 sm:$0xff]   ;;  %v3598_v19 = vld [vmem:[#allocation5 + $0x98] ss:$8 sps:$4 sm:$0xff]  }
  0x3a   :  { %267 = vmatpush1.bf16.msra.mxu1 %v259_v58  ;;  %v3603_v20 = vld [vmem:[#allocation5 + $0xac] ss:$8 sps:$4 sm:$0xff]   ;;  %v3601_v22 = vld [vmem:[#allocation5 + $0xa8] ss:$8 sps:$4 sm:$0xff]   ;;  %v3604_v34 = vld [vmem:[#allocation5 + $0xb8] ss:$8 sps:$4 sm:$0xff]  }
  0x3b   :  { %1610 = vmatprep.subr.bf16.mxu1 %v3594_v15  ;;  %v3606_v35 = vld [vmem:[#allocation5 + $0xbc] ss:$8 sps:$4 sm:$0xff]   ;;  %v3609_v40 = vld [vmem:[#allocation5 + $0xcc] ss:$8 sps:$4 sm:$0xff]   ;;  %v3607_v41 = vld [vmem:[#allocation5 + $0xc8] ss:$8 sps:$4 sm:$0xff]  }
  0x3d   :  { %2889 = vmatmul.mubr.msk.bf16.vlgmr.msra.gmra.mrb[0].mxu1 %vm220_vm1, %v3163_v59 }
  0x3e   :  { %306 = vmatprep.mubr.bf16.mxu1 %v4646_v0  ;;  %1611 = vmatpush1.bf16.msra.mxu1 %v3592_v14 }
  0x3f   :  { %1612 = vmatprep.subr.bf16.mxu1 %v3597_v16 }
  0x40   :  { %2920 = vmatmul.mubr.msk.bf16.gmra.mrb[8].mxu0 %vm220_vm1, %v3928_v21 }
  0x41   :  { %553 = vmatprep.mubr.bf16.mxu0 %v4646_v0 }
  0x42   :  { %1613 = vmatpush1.bf16.msra.mxu1 %v3595_v17 }
  0x45   :  { %2890 = vmatmul.mubr.msk.bf16.gmra.mrb[4].mxu1 %vm220_vm1, %v3908_v12 }
  0x46   :  { %316 = vmatprep.mubr.bf16.mxu1 %v4646_v0 }
  0x48   :  { %2921 = vmatmul.mubr.msk.bf16.gmra.mrb[12].mxu0 %vm220_vm1, %v3945_v24 }
  0x49   :  { %563 = vmatprep.mubr.bf16.mxu0 %v4646_v0 }
  0x4d   :  { %2891 = vmatmul.mubr.msk.bf16.gmra.mrb[8].mxu1 %vm220_vm1, %v3165_v60 }
  0x4e   :  { %326 = vmatprep.mubr.bf16.mxu1 %v4646_v0 }
  0x50   :  { %2922 = vmatmul.mubr.msk.bf16.gmra.mrb[16].mxu0 %vm220_vm1, %v3962_v27 }
  0x51   :  { %573 = vmatprep.mubr.bf16.mxu0 %v4646_v0 }
  0x55   :  { %2892 = vmatmul.mubr.msk.bf16.gmra.mrb[12].mxu1 %vm220_vm1, %v3166_v63 }
  0x56   :  { %336 = vmatprep.mubr.bf16.mxu1 %v4646_v0 }
  0x58   :  { %2923 = vmatmul.mubr.msk.bf16.gmra.mrb[20].mxu0 %vm220_vm1, %v3979_v30 }
  0x59   :  { %583 = vmatprep.mubr.bf16.mxu0 %v4646_v0 }
  0x5d   :  { %2893 = vmatmul.mubr.msk.bf16.gmra.mrb[16].mxu1 %vm220_vm1, %v3167_v2 }
  0x5e   :  { %346 = vmatprep.mubr.bf16.mxu1 %v4646_v0 }
  0x60   :  { %2924 = vmatmul.mubr.msk.bf16.gmra.mrb[24].mxu0 %vm220_vm1, %v3996_v33 }
  0x61   :  { %593 = vmatprep.mubr.bf16.mxu0 %v4646_v0 }
  0x65   :  { %2894 = vmatmul.mubr.msk.bf16.gmra.mrb[20].mxu1 %vm220_vm1, %v3168_v7 }
  0x66   :  { %356 = vmatprep.mubr.bf16.mxu1 %v4646_v0 }
  0x68   :  { %2925 = vmatmul.mubr.msk.bf16.gmra.mrb[28].mxu0 %vm220_vm1, %v4013_v36 }
  0x69   :  { %603 = vmatprep.mubr.bf16.mxu0 %v4646_v0 }
  0x6d   :  { %2895 = vmatmul.mubr.msk.bf16.gmra.mrb[24].mxu1 %vm220_vm1, %v3169_v8 }
  0x6e   :  { %366 = vmatprep.mubr.bf16.mxu1 %v4646_v0 }
  0x70   :  { %2926 = vmatmul.mubr.msk.bf16.gmra.mrb[32].mxu0 %vm220_vm1, %v4030_v39 }
  0x71   :  { %613 = vmatprep.mubr.bf16.mxu0 %v4646_v0 }
  0x75   :  { %2896 = vmatmul.mubr.msk.bf16.gmra.mrb[28].mxu1 %vm220_vm1, %v3170_v9 }
  0x76   :  { %376 = vmatprep.mubr.bf16.mxu1 %v4646_v0 }
  0x78   :  { %2927 = vmatmul.mubr.msk.bf16.gmra.mrb[36].mxu0 %vm220_vm1, %v4047_v42 }
  0x79   :  { %623 = vmatprep.mubr.bf16.mxu0 %v4646_v0 }
  0x7d   :  { %2897 = vmatmul.mubr.msk.bf16.gmra.mrb[32].mxu1 %vm220_vm1, %v3171_v10 }
  0x7e   :  { %386 = vmatprep.mubr.bf16.mxu1 %v4646_v0 }
  0x80   :  { %2928 = vmatmul.mubr.msk.bf16.gmra.mrb[40].mxu0 %vm220_vm1, %v4064_v45 }
  0x81   :  { %633 = vmatprep.mubr.bf16.mxu0 %v4646_v0 }
  0x85   :  { %2898 = vmatmul.mubr.msk.bf16.gmra.mrb[36].mxu1 %vm220_vm1, %v3172_v11 }
  0x86   :  { %396 = vmatprep.mubr.bf16.mxu1 %v4646_v0 }
  0x88   :  { %2929 = vmatmul.mubr.msk.bf16.gmra.mrb[44].mxu0 %vm220_vm1, %v4081_v48 }
  0x89   :  { %706 = vmatprep.mubr.bf16.mxu0 %v4646_v0 }
  0x90   :  { %2936 = vmatmul.mubr.msk.bf16.vlgmr.msra.gmra.mrb[0].mxu0 %vm220_vm1, %v3176_v18  ;;  %v3600_v18 = vld [vmem:[#allocation5 + $0x9c] ss:$8 sps:$4 sm:$0xff]  }
  0x91   :  { %906 = vmatpush1.bf16.msra.mxu0 %v3574_v49  ;;  %716 = vmatprep.mubr.bf16.mxu0 %v4646_v0 }
  0x92   :  { %2953 = vmatprep.subr.msk.bf16.mxu0 %vm257_vm0, %v3577_v50  ;;  %1614 = vmatprep.subr.bf16.mxu1 %v3600_v18 }
  0x93   :  { %1615 = vmatpush1.bf16.msra.mxu1 %v3598_v19 }
  0x94   :  { %1616 = vmatprep.subr.bf16.mxu1 %v3603_v20 }
  0x95   :  { %908 = vmatpush1.bf16.msra.mxu0 %v900_v52 }
  0x96   :  { %1136 = vmatprep.subr.bf16.mxu0 %v3582_v53 }
  0x97   :  { %1617 = vmatpush1.bf16.msra.mxu1 %v3601_v22 }
  0x98   :  { %2937 = vmatmul.mubr.msk.bf16.gmra.mrb[4].mxu0 %vm220_vm1, %v3928_v21  ;;  %1618 = vmatprep.subr.bf16.mxu1 %v3606_v35 }
  0x99   :  { %726 = vmatprep.mubr.bf16.mxu0 %v4646_v0 }
  0x9b   :  { %1619 = vmatpush1.bf16.msra.mxu1 %v3604_v34 }
  0x9c   :  { %1620 = vmatprep.subr.bf16.mxu1 %v3609_v40 }
  0x9f   :  { %1621 = vmatpush1.bf16.msra.mxu1 %v3607_v41 }
  0xa0   :  { %2938 = vmatmul.mubr.msk.bf16.gmra.mrb[8].mxu0 %vm220_vm1, %v3945_v24 }
  0xa1   :  { %736 = vmatprep.mubr.bf16.mxu0 %v4646_v0 }
  0xa8   :  { %2939 = vmatmul.mubr.msk.bf16.gmra.mrb[12].mxu0 %vm220_vm1, %v3962_v27 }
  0xa9   :  { %746 = vmatprep.mubr.bf16.mxu0 %v4646_v0 }
  0xb0   :  { %2940 = vmatmul.mubr.msk.bf16.gmra.mrb[16].mxu0 %vm220_vm1, %v3979_v30 }
  0xb1   :  { %756 = vmatprep.mubr.bf16.mxu0 %v4646_v0 }
  0xb8   :  { %2941 = vmatmul.mubr.msk.bf16.gmra.mrb[20].mxu0 %vm220_vm1, %v3996_v33 }
  0xb9   :  { %766 = vmatprep.mubr.bf16.mxu0 %v4646_v0 }
  0xc0   :  { %2942 = vmatmul.mubr.msk.bf16.gmra.mrb[24].mxu0 %vm220_vm1, %v4013_v36 }
  0xc1   :  { %776 = vmatprep.mubr.bf16.mxu0 %v4646_v0 }
  0xc8   :  { %2943 = vmatmul.mubr.msk.bf16.gmra.mrb[28].mxu0 %vm220_vm1, %v4030_v39 }
  0xc9   :  { %786 = vmatprep.mubr.bf16.mxu0 %v4646_v0 }
  0xd0   :  { %2944 = vmatmul.mubr.msk.bf16.gmra.mrb[32].mxu0 %vm220_vm1, %v4047_v42 }
  0xd1   :  { %796 = vmatprep.mubr.bf16.mxu0 %v4646_v0 }
  0xd8   :  { %2945 = vmatmul.mubr.msk.bf16.gmra.mrb[36].mxu0 %vm220_vm1, %v4064_v45 }
  0xd9   :  { %806 = vmatprep.mubr.bf16.mxu0 %v4646_v0 }
  0xe0   :  { %2946 = vmatmul.mubr.msk.bf16.gmra.mrb[40].mxu0 %vm220_vm1, %v4081_v48 }
  0xe1   :  { %816 = vmatprep.mubr.bf16.mxu0 %v4646_v0 }
  0xe8   :  { %2947 = vmatmul.mubr.msk.bf16.gmra.mrb[44].mxu0 %vm220_vm1, %v4144_v1 }
  0xe9   :  { %937 = vmatprep.mubr.bf16.mxu0 %v4646_v0 }
  0xf0   :  { %2954 = vmatmul.mubr.msk.bf16.vlgmr.msra.gmra.mrb[0].mxu0 %vm220_vm1, %v3908_v12  ;;  %v3173_v12 = vpack.c.bf16 %v4072_v46, %v4060_v44  ;;  %v3612_v44 = vld [vmem:[#allocation5 + $0xdc] ss:$8 sps:$4 sm:$0xff]   ;;  %v3610_v46 = vld [vmem:[#allocation5 + $0xd8] ss:$8 sps:$4 sm:$0xff]  }
  0xf1   :  { %1137 = vmatpush1.bf16.msra.mxu0 %v3580_v3  ;;  %947 = vmatprep.mubr.bf16.mxu0 %v4646_v0  ;;  %v3617_v3 = vld [vmem:[#allocation5 + $0x4] ss:$8 sps:$4 sm:$0xff]  }
  0xf2   :  { %2971 = vmatprep.subr.msk.bf16.mxu0 %vm257_vm0, %v3583_v4  ;;  %2899 = vmatmul.mubr.msk.bf16.gmra.mrb[40].mxu1 %vm220_vm1, %v3173_v12 }
  0xf3   :  { %406 = vmatprep.mubr.bf16.mxu1 %v4646_v0  ;;  %1622 = vmatprep.subr.bf16.mxu1 %v3612_v44 }
  0xf4   :  { %1623 = vmatpush1.bf16.msra.mxu1 %v3610_v46 }
  0xf5   :  { %1139 = vmatpush1.bf16.msra.mxu0 %v1131_v6 }
  0xf8   :  { %2955 = vmatmul.mubr.msk.bf16.gmra.mrb[4].mxu0 %vm220_vm1, %v3165_v60 }
  0xf9   :  { %957 = vmatprep.mubr.bf16.mxu0 %v4646_v0 }
  0xfa   :  { %2900 = vmatmul.mubr.msk.bf16.gmra.mrb[44].mxu1 %vm220_vm1, %v3174_v13 }
  0xfb   :  { %1642 = vmatprep.mubr.bf16.mxu1 %v4646_v0 }
 0x100   :  { %2956 = vmatmul.mubr.msk.bf16.gmra.mrb[8].mxu0 %vm220_vm1, %v3166_v63 }
 0x101   :  { %967 = vmatprep.mubr.bf16.mxu0 %v4646_v0 }
 0x108   :  { %2957 = vmatmul.mubr.msk.bf16.gmra.mrb[12].mxu0 %vm220_vm1, %v3167_v2 }
 0x109   :  { %977 = vmatprep.mubr.bf16.mxu0 %v4646_v0 }
 0x110   :  { %2958 = vmatmul.mubr.msk.bf16.gmra.mrb[16].mxu0 %vm220_vm1, %v3168_v7 }
 0x111   :  { %987 = vmatprep.mubr.bf16.mxu0 %v4646_v0 }
 0x118   :  { %2959 = vmatmul.mubr.msk.bf16.gmra.mrb[20].mxu0 %vm220_vm1, %v3169_v8 }
 0x119   :  { %997 = vmatprep.mubr.bf16.mxu0 %v4646_v0 }
 0x120   :  { %2960 = vmatmul.mubr.msk.bf16.gmra.mrb[24].mxu0 %vm220_vm1, %v3170_v9 }
 0x121   :  { %1007 = vmatprep.mubr.bf16.mxu0 %v4646_v0 }
 0x128   :  { %2961 = vmatmul.mubr.msk.bf16.gmra.mrb[28].mxu0 %vm220_vm1, %v3171_v10 }
 0x129   :  { %1017 = vmatprep.mubr.bf16.mxu0 %v4646_v0 }
 0x130   :  { %2962 = vmatmul.mubr.msk.bf16.gmra.mrb[32].mxu0 %vm220_vm1, %v3172_v11 }
 0x131   :  { %1027 = vmatprep.mubr.bf16.mxu0 %v4646_v0 }
 0x138   :  { %2963 = vmatmul.mubr.msk.bf16.gmra.mrb[36].mxu0 %vm220_vm1, %v3173_v12 }
 0x139   :  { %1037 = vmatprep.mubr.bf16.mxu0 %v4646_v0 }
 0x140   :  { %2964 = vmatmul.mubr.msk.bf16.gmra.mrb[40].mxu0 %vm220_vm1, %v3174_v13 }
 0x141   :  { %1047 = vmatprep.mubr.bf16.mxu0 %v4646_v0 }
 0x148   :  { %2965 = vmatmul.mubr.msk.bf16.gmra.mrb[44].mxu0 %vm220_vm1, %v3188_v25 }
 0x149   :  { %1168 = vmatprep.mubr.bf16.mxu0 %v4646_v0 }
 0x150   :  { %2972 = vmatmul.mubr.msk.bf16.vlgmr.msra.gmra.mrb[0].mxu0 %vm220_vm1, %v3928_v21  ;;  %v4245_v21 = vpop.f32.mrb[0].mxu1 }
 0x151   :  { %1178 = vmatprep.mubr.bf16.mxu0 %v4646_v0  ;;  %v4251_v26 = vpop.f32.mrb[1].mxu1 }
 0x158   :  { %2973 = vmatmul.mubr.msk.bf16.gmra.mrb[4].mxu0 %vm220_vm1, %v3945_v24  ;;  %v89_v24 = vld [vmem:[%s4636_s0 + $0xd8] sm:$0xff] }
 0x159   :  { %1188 = vmatprep.mubr.bf16.mxu0 %v4646_v0  ;;  %v3189_v29 = vpack.c.bf16 %v89_v24, %v88_v23 }
 0x160   :  { %2974 = vmatmul.mubr.msk.bf16.gmra.mrb[8].mxu0 %vm220_vm1, %v3962_v27  ;;  %v4253_v27 = vpop.f32.mrb[2].mxu1 }
 0x161   :  { %1198 = vmatprep.mubr.bf16.mxu0 %v4646_v0  ;;  %v4255_v28 = vpop.f32.mrb[3].mxu1 }
 0x168   :  { %2975 = vmatmul.mubr.msk.bf16.gmra.mrb[12].mxu0 %vm220_vm1, %v3979_v30  ;;  %v4258_v30 = vpop.f32.mrb[4].mxu1 }
 0x169   :  { %1208 = vmatprep.mubr.bf16.mxu0 %v4646_v0  ;;  %v4260_v31 = vpop.f32.mrb[5].mxu1 }
 0x16a   :  { %v4262_v32 = vpop.f32.mrb[6].mxu1 }
 0x170   :  { %2976 = vmatmul.mubr.msk.bf16.gmra.mrb[16].mxu0 %vm220_vm1, %v3996_v33  ;;  %v4264_v33 = vpop.f32.mrb[7].mxu1 }
 0x171   :  { %1218 = vmatprep.mubr.bf16.mxu0 %v4646_v0 }
 0x178   :  { %2977 = vmatmul.mubr.msk.bf16.gmra.mrb[20].mxu0 %vm220_vm1, %v4013_v36  ;;  %v4266_v36 = vpop.f32.mrb[8].mxu1 }
 0x179   :  { %1228 = vmatprep.mubr.bf16.mxu0 %v4646_v0  ;;  %v4268_v37 = vpop.f32.mrb[9].mxu1 }
 0x17a   :  { %v4270_v38 = vpop.f32.mrb[10].mxu1 }
 0x180   :  { %2978 = vmatmul.mubr.msk.bf16.gmra.mrb[24].mxu0 %vm220_vm1, %v4030_v39  ;;  %v4272_v39 = vpop.f32.mrb[11].mxu1 }
 0x181   :  { %1238 = vmatprep.mubr.bf16.mxu0 %v4646_v0 }
 0x188   :  { %2979 = vmatmul.mubr.msk.bf16.gmra.mrb[28].mxu0 %vm220_vm1, %v4047_v42  ;;  %v4274_v42 = vpop.f32.mrb[12].mxu1 }
 0x189   :  { %1248 = vmatprep.mubr.bf16.mxu0 %v4646_v0  ;;  %v4276_v43 = vpop.f32.mrb[13].mxu1 }
 0x190   :  { %2980 = vmatmul.mubr.msk.bf16.gmra.mrb[32].mxu0 %vm220_vm1, %v4064_v45  ;;  %v4278_v45 = vpop.f32.mrb[14].mxu1 }
 0x191   :  { %1258 = vmatprep.mubr.bf16.mxu0 %v4646_v0  ;;  %v4280_v47 = vpop.f32.mrb[15].mxu1 }
 0x192   :  { %v4284_v52 = vpop.f32.mrb[16].mxu1 }
 0x193   :  { %v4286_v53 = vpop.f32.mrb[17].mxu1 }
 0x194   :  { %v4288_v54 = vpop.f32.mrb[18].mxu1 }
 0x195   :  { %v4290_v55 = vpop.f32.mrb[19].mxu1 }
 0x196   :  { %v4292_v56 = vpop.f32.mrb[20].mxu1 }
 0x197   :  { %v4294_v57 = vpop.f32.mrb[21].mxu1 }
 0x198   :  { %2981 = vmatmul.mubr.msk.bf16.gmra.mrb[36].mxu0 %vm220_vm1, %v4081_v48  ;;  %v1446_v48 = vld [vmem:[#allocation5 + $0xe8] sm:$0xff]  ;;  %v4296_v58 = vpop.f32.mrb[22].mxu1 }
 0x199   :  { %1268 = vmatprep.mubr.bf16.mxu0 %v4646_v0  ;;  %v3004_v49 = vcombine.high %v1446_v48, %v1446_v48  ;;  %v3003_v50 = vcombine.low %v1446_v48, %v1446_v48  ;;  %v4298_v59 = vpop.f32.mrb[23].mxu1 }
 0x19a   :  { %v4300_v60 = vpop.f32.mrb[24].mxu1 }
 0x19b   :  { %3005 = vmatprep.subr.msk.bf16.mxu1 %vm1603_vm2, %v3004_v49  ;;  %v1605_v51 = vsel %vm1603_vm2, %v3003_v50, 0  ;;  %v4302_v61 = vpop.f32.mrb[25].mxu1 }
 0x19c   :  { %1625 = vmatpush1.bf16.msra.mxu1 %v1605_v51  ;;  %v4304_v62 = vpop.f32.mrb[26].mxu1 }
 0x19d   :  { %v4306_v63 = vpop.f32.mrb[27].mxu1  ;;  %1782 = vmatprep.subr.bf16.mxu1 %v3617_v3 }
 0x1a0   :  { %2982 = vmatmul.mubr.msk.bf16.gmra.mrb[40].mxu0 %vm220_vm1, %v4144_v1  ;;  %v4308_v1 = vpop.f32.mrb[28].mxu1 }
 0x1a1   :  { %1278 = vmatprep.mubr.bf16.mxu0 %v4646_v0  ;;  %v4310_v2 = vpop.f32.mrb[29].mxu1 }
 0x1a2   :  { %v4312_v4 = vpop.f32.mrb[30].mxu1 }
 0x1a3   :  { %v4314_v5 = vpop.f32.mrb[31].mxu1 }
 0x1a4   :  { %v4316_v6 = vpop.f32.mrb[32].mxu1 }
 0x1a5   :  { %v4318_v7 = vpop.f32.mrb[33].mxu1 }
 0x1a6   :  { %v4320_v8 = vpop.f32.mrb[34].mxu1 }
 0x1a7   :  { %v4322_v9 = vpop.f32.mrb[35].mxu1 }
 0x1a8   :  { %2983 = vmatmul.mubr.msk.bf16.gmra.mrb[44].mxu0 %vm220_vm1, %v3189_v29  ;;  %v4324_v10 = vpop.f32.mrb[36].mxu1 }
 0x1a9   :  { %v4326_v11 = vpop.f32.mrb[37].mxu1 }
 0x1aa   :  { %v4328_v12 = vpop.f32.mrb[38].mxu1 }
 0x1ab   :  { %v4330_v13 = vpop.f32.mrb[39].mxu1 }
 0x1c5   :  { %v4332_v14 = vpop.f32.mrb[40].mxu1 }
 0x1c6   :  { %v4334_v15 = vpop.f32.mrb[41].mxu1 }
 0x1c7   :  { %v4336_v16 = vpop.f32.mrb[42].mxu1 }
 0x1c8   :  { %v4338_v17 = vpop.f32.mrb[43].mxu1 }
 0x1cd   :  { %v4340_v18 = vpop.f32.mrb[44].mxu1 }
 0x1ce   :  { %v4342_v19 = vpop.f32.mrb[45].mxu1 }
 0x1cf   :  { %v4344_v20 = vpop.f32.mrb[46].mxu1 }
 0x1d0   :  { %v4346_v22 = vpop.f32.mrb[47].mxu1 }
 0x223   :  { %v1170_v23 = vpop.f32.mrb[0].mxu0 }
 0x224   :  { %v3298_v25 = vadd.f32 %v1170_v23, %v4245_v21  ;;  %v1172_v24 = vpop.f32.mrb[1].mxu0 }
 0x225   :  { %v3299_v29 = vadd.f32 %v1172_v24, %v4251_v26  ;;  %v1174_v34 = vpop.f32.mrb[2].mxu0 }
 0x226   :  { %v3300_v35 = vadd.f32 %v1174_v34, %v4253_v27  ;;  %v1176_v40 = vpop.f32.mrb[3].mxu0  ;;  %v4359_v27 = vld [vmem:[%s4638_s2] ss:$0 sm:$0xff] }
 0x227   :  { %v3301_v41 = vadd.f32 %v1176_v40, %v4255_v28 }
 0x228   :  { %v1337_v44 = vmax.f32 %v3298_v25, %v3300_v35 }
 0x229   :  { %v1349_v46 = vmax.f32 %v3299_v29, %v3301_v41 }
 0x22b   :  { %v1361_v48 = vmax.f32 %v1337_v44, %v1349_v46  ;;  %v1180_v49 = vpop.f32.mrb[4].mxu0 }
 0x22c   :  { %v3302_v50 = vadd.f32 %v1180_v49, %v4258_v30  ;;  %v1182_v51 = vpop.f32.mrb[5].mxu0 }
 0x22d   :  { %v3303_v3 = vadd.f32 %v1182_v51, %v4260_v31  ;;  %v1184_v0 = vpop.f32.mrb[6].mxu0  ;;  %v1380_v24 = vadd.f32 %v4359_v27, %v1361_v48 }
 0x22e   :  { %v3304_v21 = vadd.f32 %v1184_v0, %v4262_v32  ;;  %v1186_v23 = vpop.f32.mrb[7].mxu0 }
 0x22f   :  { %v3305_v26 = vadd.f32 %v1186_v23, %v4264_v33  ;;  %v1392_v41 = vmax.f32 %v1380_v24, 0.0 }
 0x230   :  { %v1338_v28 = vmax.f32 %v3302_v50, %v3304_v21 }
 0x231   :  { %v1350_v25 = vmax.f32 %v3303_v3, %v3305_v26 }
 0x233   :  { %v1362_v29 = vmax.f32 %v1338_v28, %v1350_v25  ;;  %v1190_v30 = vpop.f32.mrb[8].mxu0 }
 0x234   :  { %v3306_v34 = vadd.f32 %v1190_v30, %v4266_v36  ;;  %v1192_v31 = vpop.f32.mrb[9].mxu0 }
 0x235   :  { %v1381_v35 = vadd.f32 %v4359_v27, %v1362_v29  ;;  %v3307_v0 = vadd.f32 %v1192_v31, %v4268_v37  ;;  %v1194_v32 = vpop.f32.mrb[10].mxu0  ;;  %v3615_v29 = vld [vmem:[#allocation5] ss:$8 sps:$4 sm:$0xff]   ;;  %v3620_v31 = vld [vmem:[#allocation5 + $0x14] ss:$8 sps:$4 sm:$0xff]  }
 0x236   :  { %v3308_v33 = vadd.f32 %v1194_v32, %v4270_v38  ;;  %v1196_v40 = vpop.f32.mrb[11].mxu0  ;;  %v4648_v32 = vmov 0  }
 0x237   :  { %v1393_v44 = vmax.f32 %v1381_v35, 0.0  ;;  %v3309_v46 = vadd.f32 %v1196_v40, %v4272_v39 }
 0x238   :  { %v1339_v49 = vmax.f32 %v3306_v34, %v3308_v33 }
 0x239   :  { %v4367_v50 = vpack.c.bf16 %v1393_v44, %v1392_v41  ;;  %v1351_v48 = vmax.f32 %v3307_v0, %v3309_v46  ;;  %v3623_v41 = vld [vmem:[#allocation5 + $0x24] ss:$8 sps:$4 sm:$0xff]  }
 0x23b   :  { %v1363_v51 = vmax.f32 %v1339_v49, %v1351_v48  ;;  %v1200_v3 = vpop.f32.mrb[12].mxu0 }
 0x23c   :  { %v3310_v36 = vadd.f32 %v1200_v3, %v4274_v42  ;;  %v1202_v21 = vpop.f32.mrb[13].mxu0 }
 0x23d   :  { %v1382_v23 = vadd.f32 %v4359_v27, %v1363_v51  ;;  %v3311_v37 = vadd.f32 %v1202_v21, %v4276_v43  ;;  %v1204_v26 = vpop.f32.mrb[14].mxu0 }
 0x23e   :  { %v3312_v38 = vadd.f32 %v1204_v26, %v4278_v45  ;;  %v1206_v28 = vpop.f32.mrb[15].mxu0  ;;  %v3618_v45 = vld [vmem:[#allocation5 + $0x10] ss:$8 sps:$4 sm:$0xff]  }
 0x23f   :  { %v1394_v25 = vmax.f32 %v1382_v23, 0.0  ;;  %v3313_v39 = vadd.f32 %v1206_v28, %v4280_v47 }
 0x240   :  { %v1340_v24 = vmax.f32 %v3310_v36, %v3312_v38  ;;  %v3626_v36 = vld [vmem:[#allocation5 + $0x34] ss:$8 sps:$4 sm:$0xff]   ;;  %v3624_v38 = vld [vmem:[#allocation5 + $0x30] ss:$8 sps:$4 sm:$0xff]  }
 0x241   :  { %v3190_v30 = vpack.c.bf16 %v1394_v25, %v1393_v44  ;;  %v1352_v34 = vmax.f32 %v3311_v37, %v3313_v39  ;;  %v3629_v39 = vld [vmem:[#allocation5 + $0x44] ss:$8 sps:$4 sm:$0xff]  }
 0x243   :  { %v1364_v35 = vmax.f32 %v1340_v24, %v1352_v34  ;;  %v1210_v42 = vpop.f32.mrb[16].mxu0  ;;  %3006 = vmatmul.mubr.msk.bf16.vlgmr.msra.gmra.mrb[48].mxu1 %vm1590_vm3, %v3190_v30 }
 0x244   :  { %v3314_v0 = vadd.f32 %v1210_v42, %v4284_v52  ;;  %v1212_v43 = vpop.f32.mrb[17].mxu0  ;;  %1652 = vmatprep.mubr.bf16.mxu1 %v4648_v32  ;;  %1783 = vmatpush1.bf16.msra.mxu1 %v3615_v29  ;;  %v3621_v52 = vld [vmem:[#allocation5 + $0x20] ss:$8 sps:$4 sm:$0xff]   ;;  %v3632_v42 = vld [vmem:[#allocation5 + $0x54] ss:$8 sps:$4 sm:$0xff]  }
 0x245   :  { %v1383_v33 = vadd.f32 %v4359_v27, %v1364_v35  ;;  %v3315_v47 = vadd.f32 %v1212_v43, %v4286_v53  ;;  %v1214_v40 = vpop.f32.mrb[18].mxu0  ;;  %1784 = vmatprep.subr.bf16.mxu1 %v3620_v31  ;;  %v3627_v31 = vld [vmem:[#allocation5 + $0x40] ss:$8 sps:$4 sm:$0xff]  }
 0x246   :  { %v3316_v44 = vadd.f32 %v1214_v40, %v4288_v54  ;;  %v1216_v46 = vpop.f32.mrb[19].mxu0  ;;  %v3635_v40 = vld [vmem:[#allocation5 + $0x64] ss:$8 sps:$4 sm:$0xff]  }
 0x247   :  { %v1395_v49 = vmax.f32 %v1383_v33, 0.0  ;;  %v3317_v48 = vadd.f32 %v1216_v46, %v4290_v55  ;;  %v1430_v46 = vld [vmem:[#allocation5 + $0x70] sm:$0xff] }
 0x248   :  { %v1341_v51 = vmax.f32 %v3314_v0, %v3316_v44  ;;  %1785 = vmatpush1.bf16.msra.mxu1 %v3618_v45 }
 0x249   :  { %v1353_v3 = vmax.f32 %v3315_v47, %v3317_v48  ;;  %1786 = vmatprep.subr.bf16.mxu1 %v3623_v41  ;;  %v4381_v21 = vpack.c.bf16 %v1395_v49, %v1394_v25 }
 0x24b   :  { %v1365_v23 = vmax.f32 %v1341_v51, %v1353_v3  ;;  %v1220_v37 = vpop.f32.mrb[20].mxu0  ;;  %v3633_v51 = vld [vmem:[#allocation5 + $0x60] ss:$8 sps:$4 sm:$0xff]   ;;  %v3029_v3 = vcombine.high %v1430_v46, %v1430_v46 }
 0x24c   :  { %v3318_v53 = vadd.f32 %v1220_v37, %v4292_v56  ;;  %v1222_v26 = vpop.f32.mrb[21].mxu0  ;;  %1787 = vmatpush1.bf16.msra.mxu1 %v3621_v52 }
 0x24d   :  { %v1384_v54 = vadd.f32 %v4359_v27, %v1365_v23  ;;  %v3319_v28 = vadd.f32 %v1222_v26, %v4294_v57  ;;  %v1224_v55 = vpop.f32.mrb[22].mxu0  ;;  %1788 = vmatprep.subr.bf16.mxu1 %v3626_v36  ;;  %v3028_v36 = vcombine.low %v1430_v46, %v1430_v46 }
 0x24e   :  { %v3320_v24 = vadd.f32 %v1224_v55, %v4296_v58  ;;  %v1226_v29 = vpop.f32.mrb[23].mxu0 }
 0x24f   :  { %v1396_v30 = vmax.f32 %v1384_v54, 0.0  ;;  %v3321_v25 = vadd.f32 %v1226_v29, %v4298_v59  ;;  %v3630_v59 = vld [vmem:[#allocation5 + $0x50] ss:$8 sps:$4 sm:$0xff]   ;;  %v1777_v54 = vsel %vm1603_vm2, %v3028_v36, 0 }
 0x250   :  { %v1342_v34 = vmax.f32 %v3318_v53, %v3320_v24  ;;  %1789 = vmatpush1.bf16.msra.mxu1 %v3624_v38 }
 0x251   :  { %v1354_v56 = vmax.f32 %v3319_v28, %v3321_v25  ;;  %v4388_v35 = vpack.c.bf16 %v1396_v30, %v1395_v49  ;;  %1790 = vmatprep.subr.bf16.mxu1 %v3629_v39  ;;  %v3640_v28 = vld [vmem:[#allocation5 + $0xf4] ss:$8 sps:$4 sm:$0xff]  }
 0x253   :  { %v1366_v0 = vmax.f32 %v1342_v34, %v1354_v56  ;;  %v1230_v43 = vpop.f32.mrb[24].mxu0  ;;  %3007 = vmatmul.mubr.msk.bf16.gmra.mrb[52].mxu1 %vm1590_vm3, %v4388_v35 }
 0x254   :  { %v3322_v57 = vadd.f32 %v1230_v43, %v4300_v60  ;;  %v1232_v58 = vpop.f32.mrb[25].mxu0  ;;  %1662 = vmatprep.mubr.bf16.mxu1 %v4648_v32  ;;  %1791 = vmatpush1.bf16.msra.mxu1 %v3627_v31 }
 0x255   :  { %v1385_v45 = vadd.f32 %v4359_v27, %v1366_v0  ;;  %v3323_v33 = vadd.f32 %v1232_v58, %v4302_v61  ;;  %v1234_v47 = vpop.f32.mrb[26].mxu0  ;;  %1792 = vmatprep.subr.bf16.mxu1 %v3632_v42 }
 0x256   :  { %v3324_v41 = vadd.f32 %v1234_v47, %v4304_v62  ;;  %v1236_v44 = vpop.f32.mrb[27].mxu0 }
 0x257   :  { %v1397_v49 = vmax.f32 %v1385_v45, 0.0  ;;  %v3325_v48 = vadd.f32 %v1236_v44, %v4306_v63 }
 0x258   :  { %v1343_v60 = vmax.f32 %v3322_v57, %v3324_v41  ;;  %1793 = vmatpush1.bf16.msra.mxu1 %v3630_v59 }
 0x259   :  { %v1355_v52 = vmax.f32 %v3323_v33, %v3325_v48  ;;  %1794 = vmatprep.subr.bf16.mxu1 %v3635_v40  ;;  %v4398_v23 = vpack.c.bf16 %v1397_v49, %v1396_v30 }
 0x25b   :  { %v1367_v61 = vmax.f32 %v1343_v60, %v1355_v52  ;;  %v1240_v37 = vpop.f32.mrb[28].mxu0 }
 0x25c   :  { %v3326_v53 = vadd.f32 %v1240_v37, %v4308_v1  ;;  %v1242_v26 = vpop.f32.mrb[29].mxu0  ;;  %1795 = vmatpush1.bf16.msra.mxu1 %v3633_v51 }
 0x25d   :  { %v1386_v62 = vadd.f32 %v4359_v27, %v1367_v61  ;;  %v3327_v38 = vadd.f32 %v1242_v26, %v4310_v2  ;;  %v1244_v63 = vpop.f32.mrb[30].mxu0  ;;  %3030 = vmatprep.subr.msk.bf16.mxu1 %vm1603_vm2, %v3029_v3 }
 0x25e   :  { %v3328_v55 = vadd.f32 %v1244_v63, %v4312_v4  ;;  %v1246_v39 = vpop.f32.mrb[31].mxu0  ;;  %v3638_v63 = vld [vmem:[#allocation5 + $0xf0] ss:$8 sps:$4 sm:$0xff]  }
 0x25f   :  { %v1398_v24 = vmax.f32 %v1386_v62, 0.0  ;;  %v3329_v29 = vadd.f32 %v1246_v39, %v4314_v5 }
 0x260   :  { %v1344_v30 = vmax.f32 %v3326_v53, %v3328_v55  ;;  %1797 = vmatpush1.bf16.msra.mxu1 %v1777_v54 }
 0x261   :  { %v1356_v1 = vmax.f32 %v3327_v38, %v3329_v29  ;;  %v4407_v25 = vpack.c.bf16 %v1398_v24, %v1397_v49  ;;  %1942 = vmatprep.subr.bf16.mxu1 %v3640_v28  ;;  %v3643_v28 = vld [vmem:[#allocation5 + $0x104] ss:$8 sps:$4 sm:$0xff]  }
 0x263   :  { %v1368_v34 = vmax.f32 %v1344_v30, %v1356_v1  ;;  %v1250_v2 = vpop.f32.mrb[32].mxu0  ;;  %3008 = vmatmul.mubr.msk.bf16.gmra.mrb[56].mxu1 %vm1590_vm3, %v4407_v25  ;;  %v3646_v1 = vld [vmem:[#allocation5 + $0x114] ss:$8 sps:$4 sm:$0xff]  }
 0x264   :  { %v3330_v31 = vadd.f32 %v1250_v2, %v4316_v6  ;;  %v1252_v56 = vpop.f32.mrb[33].mxu0  ;;  %1672 = vmatprep.mubr.bf16.mxu1 %v4648_v32 }
 0x265   :  { %v1387_v4 = vadd.f32 %v4359_v27, %v1368_v34  ;;  %v3331_v5 = vadd.f32 %v1252_v56, %v4318_v7  ;;  %v1254_v42 = vpop.f32.mrb[34].mxu0 }
 0x266   :  { %v3332_v0 = vadd.f32 %v1254_v42, %v4320_v8  ;;  %v1256_v43 = vpop.f32.mrb[35].mxu0 }
 0x267   :  { %v1399_v57 = vmax.f32 %v1387_v4, 0.0  ;;  %v3333_v58 = vadd.f32 %v1256_v43, %v4322_v9 }
 0x268   :  { %v1345_v59 = vmax.f32 %v3330_v31, %v3332_v0 }
 0x269   :  { %v1357_v45 = vmax.f32 %v3331_v5, %v3333_v58  ;;  %v4417_v33 = vpack.c.bf16 %v1399_v57, %v1398_v24  ;;  %v3649_v5 = vld [vmem:[#allocation5 + $0x124] ss:$8 sps:$4 sm:$0xff]  }
 0x26a   :  { %v3655_v58 = vld [vmem:[#allocation5 + $0x144] ss:$8 sps:$4 sm:$0xff]  }
 0x26b   :  { %v1369_v47 = vmax.f32 %v1345_v59, %v1357_v45  ;;  %v1260_v6 = vpop.f32.mrb[36].mxu0  ;;  %v3653_v45 = vld [vmem:[#allocation5 + $0x140] ss:$8 sps:$4 sm:$0xff]  }
 0x26c   :  { %v3334_v40 = vadd.f32 %v1260_v6, %v4324_v10  ;;  %v1262_v41 = vpop.f32.mrb[37].mxu0  ;;  %v1462_v6 = vld [vmem:[#allocation5 + $0x160] sm:$0xff] }
 0x26d   :  { %v1388_v44 = vadd.f32 %v4359_v27, %v1369_v47  ;;  %v3335_v7 = vadd.f32 %v1262_v41, %v4326_v11  ;;  %v1264_v46 = vpop.f32.mrb[38].mxu0  ;;  %v3658_v47 = vld [vmem:[#allocation5 + $0x154] ss:$8 sps:$4 sm:$0xff]   ;;  %v3050_v41 = vcombine.low %v1462_v6, %v1462_v6 }
 0x26e   :  { %v3336_v8 = vadd.f32 %v1264_v46, %v4328_v12  ;;  %v1266_v49 = vpop.f32.mrb[39].mxu0  ;;  %v3661_v46 = vld [vmem:[#allocation5 + $0x168] ss:$8 sps:$4 sm:$0xff]  }
 0x26f   :  { %v1400_v48 = vmax.f32 %v1388_v44, 0.0  ;;  %v3337_v9 = vadd.f32 %v1266_v49, %v4330_v13  ;;  %v1937_v44 = vsel %vm1603_vm2, %v3050_v41, 0  ;;  %v3664_v49 = vld [vmem:[#allocation5 + $0x178] ss:$8 sps:$4 sm:$0xff]  }
 0x270   :  { %v1346_v60 = vmax.f32 %v3334_v40, %v3336_v8  ;;  %v3051_v40 = vcombine.high %v1462_v6, %v1462_v6  ;;  %v3666_v8 = vld [vmem:[#allocation5 + $0x17c] ss:$8 sps:$4 sm:$0xff]  }
 0x271   :  { %v1358_v51 = vmax.f32 %v3335_v7, %v3337_v9  ;;  %v4424_v52 = vpack.c.bf16 %v1400_v48, %v1399_v57  ;;  %v3650_v57 = vld [vmem:[#allocation5 + $0x130] ss:$8 sps:$4 sm:$0xff]   ;;  %v3663_v7 = vld [vmem:[#allocation5 + $0x16c] ss:$8 sps:$4 sm:$0xff]  }
 0x272   :  { %v3667_v9 = vld [vmem:[#allocation5 + $0x188] ss:$8 sps:$4 sm:$0xff]  }
 0x273   :  { %v1370_v3 = vmax.f32 %v1346_v60, %v1358_v51  ;;  %v1270_v36 = vpop.f32.mrb[40].mxu0  ;;  %3009 = vmatmul.mubr.msk.bf16.gmra.mrb[60].mxu1 %vm1590_vm3, %v4424_v52  ;;  %v3672_v60 = vld [vmem:[#allocation5 + $0x19c] ss:$8 sps:$4 sm:$0xff]   ;;  %v3670_v51 = vld [vmem:[#allocation5 + $0x198] ss:$8 sps:$4 sm:$0xff]  }
 0x274   :  { %v3338_v10 = vadd.f32 %v1270_v36, %v4332_v14  ;;  %v1272_v61 = vpop.f32.mrb[41].mxu0  ;;  %1814 = vmatprep.mubr.bf16.mxu1 %v4648_v32  ;;  %v3678_v36 = vld [vmem:[#allocation5 + $0x1bc] ss:$8 sps:$4 sm:$0xff]  }
 0x275   :  { %v1389_v11 = vadd.f32 %v4359_v27, %v1370_v3  ;;  %v3339_v12 = vadd.f32 %v1272_v61, %v4334_v15  ;;  %v1274_v37 = vpop.f32.mrb[42].mxu0  ;;  %v3675_v3 = vld [vmem:[#allocation5 + $0x1ac] ss:$8 sps:$4 sm:$0xff]  }
 0x276   :  { %v3340_v13 = vadd.f32 %v1274_v37, %v4336_v16  ;;  %v1276_v53 = vpop.f32.mrb[43].mxu0  ;;  %v3641_v16 = vld [vmem:[#allocation5 + $0x100] ss:$8 sps:$4 sm:$0xff]   ;;  %v3681_v61 = vld [vmem:[#allocation5 + $0x1cc] ss:$8 sps:$4 sm:$0xff]  }
 0x277   :  { %v1401_v26 = vmax.f32 %v1389_v11, 0.0  ;;  %v3341_v62 = vadd.f32 %v1276_v53, %v4338_v17  ;;  %v1478_v11 = vld [vmem:[#allocation5 + $0x1d8] sm:$0xff] }
 0x278   :  { %v1347_v38 = vmax.f32 %v3338_v10, %v3340_v13  ;;  %v3676_v10 = vld [vmem:[#allocation5 + $0x1b8] ss:$8 sps:$4 sm:$0xff]   ;;  %v3073_v37 = vcombine.high %v1478_v11, %v1478_v11  ;;  %v3072_v13 = vcombine.low %v1478_v11, %v1478_v11 }
 0x279   :  { %v1359_v54 = vmax.f32 %v3339_v12, %v3341_v62  ;;  %v4434_v55 = vpack.c.bf16 %v1401_v26, %v1400_v48  ;;  %v3669_v48 = vld [vmem:[#allocation5 + $0x18c] ss:$8 sps:$4 sm:$0xff]   ;;  %v3679_v12 = vld [vmem:[#allocation5 + $0x1c8] ss:$8 sps:$4 sm:$0xff]   ;;  %v3715_v11 = vld [vmem:[%s4641_s5 + $0x18] sm:$0xff]  }
 0x27a   :  { %v2113_v53 = vsel %vm1603_vm2, %v3072_v13, 0  ;;  %v3684_v62 = vld [vmem:[#allocation5 + $0x1e0] ss:$8 sps:$4 sm:$0xff]  }
 0x27b   :  { %v1371_v14 = vmax.f32 %v1347_v38, %v1359_v54  ;;  %v1280_v39 = vpop.f32.mrb[44].mxu0  ;;  %3031 = vmatmul.mubr.msk.bf16.vlgmr.msra.gmra.mrb[48].mxu1 %vm1590_vm3, %v4367_v50  ;;  %v3689_v38 = vld [vmem:[#allocation5 + $0x1f4] ss:$8 sps:$4 sm:$0xff]   ;;  %v3692_v54 = vld [vmem:[#allocation5 + $0x204] ss:$8 sps:$4 sm:$0xff]  }
 0x27c   :  { %v3342_v15 = vadd.f32 %v1280_v39, %v4340_v18  ;;  %v1282_v24 = vpop.f32.mrb[45].mxu0  ;;  %1943 = vmatpush1.bf16.msra.mxu1 %v3638_v63  ;;  %1824 = vmatprep.mubr.bf16.mxu1 %v4648_v32  ;;  %v3644_v18 = vld [vmem:[#allocation5 + $0x110] ss:$8 sps:$4 sm:$0xff]  }
 0x27d   :  { %v1390_v17 = vadd.f32 %v4359_v27, %v1371_v14  ;;  %v3343_v29 = vadd.f32 %v1282_v24, %v4342_v19  ;;  %v1284_v30 = vpop.f32.mrb[46].mxu0  ;;  %1944 = vmatprep.subr.bf16.mxu1 %v3643_v28  ;;  %v3647_v19 = vld [vmem:[#allocation5 + $0x120] ss:$8 sps:$4 sm:$0xff]   ;;  %v3687_v63 = vld [vmem:[#allocation5 + $0x1f0] ss:$8 sps:$4 sm:$0xff]  }
 0x27e   :  { %v3344_v34 = vadd.f32 %v1284_v30, %v4344_v20  ;;  %v1286_v2 = vpop.f32.mrb[47].mxu0  ;;  %v3690_v28 = vld [vmem:[#allocation5 + $0x200] ss:$8 sps:$4 sm:$0xff]   ;;  %v3695_v14 = vld [vmem:[#allocation5 + $0x214] ss:$8 sps:$4 sm:$0xff]  }
 0x27f   :  { %v1402_v31 = vmax.f32 %v1390_v17, 0.0  ;;  %v3345_v50 = vadd.f32 %v1286_v2, %v4346_v22  ;;  %v3652_v22 = vld [vmem:[#allocation5 + $0x134] ss:$8 sps:$4 sm:$0xff]   ;;  %v3693_v39 = vld [vmem:[#allocation5 + $0x210] ss:$8 sps:$4 sm:$0xff]   ;;  %v3812_v2 = vmov 0.0  }
 0x280   :  { %v1348_v56 = vmax.f32 %v3342_v15, %v3344_v34  ;;  %1945 = vmatpush1.bf16.msra.mxu1 %v3641_v16  ;;  %v3698_v15 = vld [vmem:[#allocation5 + $0x224] ss:$8 sps:$4 sm:$0xff]   ;;  %v3701_v24 = vld [vmem:[#allocation5 + $0x234] ss:$8 sps:$4 sm:$0xff]   ;;  %v3699_v16 = vld [vmem:[#allocation5 + $0x230] ss:$8 sps:$4 sm:$0xff]  }
 0x281   :  { %v1360_v4 = vmax.f32 %v3343_v29, %v3345_v50  ;;  %1946 = vmatprep.subr.bf16.mxu1 %v3646_v1  ;;  %v4444_v42 = vpack.c.bf16 %v1402_v31, %v1401_v26  ;;  %v3686_v26 = vld [vmem:[#allocation5 + $0x1e4] ss:$8 sps:$4 sm:$0xff]   ;;  %v3702_v29 = vld [vmem:[#allocation5 + $0x240] ss:$8 sps:$4 sm:$0xff]  }
 0x282   :  { %v3704_v17 = vld [vmem:[#allocation5 + $0x244] ss:$8 sps:$4 sm:$0xff]  }
 0x283   :  { %v1372_v0 = vmax.f32 %v1348_v56, %v1360_v4  ;;  %3032 = vmatmul.mubr.msk.bf16.gmra.mrb[52].mxu1 %vm1590_vm3, %v4381_v21  ;;  %v3707_v34 = vld [vmem:[%s4641_s5 + $0x28] sm:$0xff]  }
 0x284   :  { %1947 = vmatpush1.bf16.msra.mxu1 %v3644_v18  ;;  %1834 = vmatprep.mubr.bf16.mxu1 %v4648_v32 }
 0x285   :  { %v1391_v20 = vadd.f32 %v4359_v27, %v1372_v0  ;;  %1948 = vmatprep.subr.bf16.mxu1 %v3649_v5  ;;  %v3656_v27 = vld [vmem:[#allocation5 + $0x150] ss:$8 sps:$4 sm:$0xff]  }
 0x287   :  { %v1403_v43 = vmax.f32 %v1391_v20, 0.0 }
 0x288   :  { %1949 = vmatpush1.bf16.msra.mxu1 %v3647_v19 }
 0x289   :  { %1950 = vmatprep.subr.bf16.mxu1 %v3652_v22  ;;  %v4450_v59 = vpack.c.bf16 %v1403_v43, %v1402_v31  ;;  %v3708_v31 = vld [vmem:[%s4641_s5 + $0x30] sm:$0xff]  }
 0x28b   :  { %3033 = vmatmul.mubr.msk.bf16.gmra.mrb[56].mxu1 %vm1590_vm3, %v4398_v23 }
 0x28c   :  { %1951 = vmatpush1.bf16.msra.mxu1 %v3650_v57  ;;  %1844 = vmatprep.mubr.bf16.mxu1 %v4648_v32 }
 0x28d   :  { %1952 = vmatprep.subr.bf16.mxu1 %v3655_v58 }
 0x290   :  { %1953 = vmatpush1.bf16.msra.mxu1 %v3653_v45 }
 0x291   :  { %1954 = vmatprep.subr.bf16.mxu1 %v3658_v47 }
 0x293   :  { %3034 = vmatmul.mubr.msk.bf16.gmra.mrb[60].mxu1 %vm1590_vm3, %v4417_v33 }
 0x294   :  { %1955 = vmatpush1.bf16.msra.mxu1 %v3656_v27  ;;  %1974 = vmatprep.mubr.bf16.mxu1 %v4648_v32 }
 0x295   :  { %3052 = vmatprep.subr.msk.bf16.mxu1 %vm1603_vm2, %v3051_v40 }
 0x298   :  { %1957 = vmatpush1.bf16.msra.mxu1 %v1937_v44 }
 0x299   :  { %2118 = vmatprep.subr.bf16.mxu1 %v3663_v7  ;;  %v3712_v7 = vld [vmem:[%s4641_s5] sm:$0xff]  }
 0x29b   :  { %3053 = vmatmul.mubr.msk.bf16.vlgmr.msra.gmra.mrb[48].mxu1 %vm1590_vm3, %v4381_v21  ;;  %v3673_v21 = vld [vmem:[#allocation5 + $0x1a8] ss:$8 sps:$4 sm:$0xff]  }
 0x29c   :  { %2119 = vmatpush1.bf16.msra.mxu1 %v3661_v46  ;;  %1984 = vmatprep.mubr.bf16.mxu1 %v4648_v32 }
 0x29d   :  { %2120 = vmatprep.subr.bf16.mxu1 %v3666_v8 }
 0x2a0   :  { %2121 = vmatpush1.bf16.msra.mxu1 %v3664_v49 }
 0x2a1   :  { %2122 = vmatprep.subr.bf16.mxu1 %v3669_v48  ;;  %v3713_v48 = vld [vmem:[%s4641_s5 + $0x8] sm:$0xff]  }
 0x2a3   :  { %3054 = vmatmul.mubr.msk.bf16.gmra.mrb[52].mxu1 %vm1590_vm3, %v4398_v23 }
 0x2a4   :  { %2123 = vmatpush1.bf16.msra.mxu1 %v3667_v9  ;;  %1994 = vmatprep.mubr.bf16.mxu1 %v4648_v32 }
 0x2a5   :  { %2124 = vmatprep.subr.bf16.mxu1 %v3672_v60 }
 0x2a8   :  { %2125 = vmatpush1.bf16.msra.mxu1 %v3670_v51 }
 0x2a9   :  { %2126 = vmatprep.subr.bf16.mxu1 %v3675_v3 }
 0x2ab   :  { %3055 = vmatmul.mubr.msk.bf16.gmra.mrb[56].mxu1 %vm1590_vm3, %v4417_v33 }
 0x2ac   :  { %2127 = vmatpush1.bf16.msra.mxu1 %v3673_v21  ;;  %2004 = vmatprep.mubr.bf16.mxu1 %v4648_v32 }
 0x2ad   :  { %2128 = vmatprep.subr.bf16.mxu1 %v3678_v36  ;;  %v3714_v36 = vld [vmem:[%s4641_s5 + $0x10] sm:$0xff]  }
 0x2b0   :  { %2129 = vmatpush1.bf16.msra.mxu1 %v3676_v10 }
 0x2b1   :  { %2130 = vmatprep.subr.bf16.mxu1 %v3681_v61 }
 0x2b3   :  { %3056 = vmatmul.mubr.msk.bf16.gmra.mrb[60].mxu1 %vm1590_vm3, %v4434_v55 }
 0x2b4   :  { %2131 = vmatpush1.bf16.msra.mxu1 %v3679_v12  ;;  %2150 = vmatprep.mubr.bf16.mxu1 %v4648_v32 }
 0x2b5   :  { %3074 = vmatprep.subr.msk.bf16.mxu1 %vm1603_vm2, %v3073_v37  ;;  %v3716_v37 = vld [vmem:[%s4641_s5 + $0x20] sm:$0xff]  }
 0x2b8   :  { %2133 = vmatpush1.bf16.msra.mxu1 %v2113_v53  ;;  %v3717_v53 = vld [vmem:[%s4641_s5 + $0x50] sm:$0xff]  }
 0x2b9   :  { %2294 = vmatprep.subr.bf16.mxu1 %v3686_v26 }
 0x2bb   :  { %3075 = vmatmul.mubr.msk.bf16.vlgmr.msra.gmra.mrb[48].mxu1 %vm1590_vm3, %v4388_v35  ;;  %v3696_v35 = vld [vmem:[#allocation5 + $0x220] ss:$8 sps:$4 sm:$0xff]  }
 0x2bc   :  { %2295 = vmatpush1.bf16.msra.mxu1 %v3684_v62  ;;  %2160 = vmatprep.mubr.bf16.mxu1 %v4648_v32  ;;  %v3718_v62 = vld [vmem:[%s4641_s5 + $0x58] sm:$0xff]  }
 0x2bd   :  { %2296 = vmatprep.subr.bf16.mxu1 %v3689_v38  ;;  %v3719_v38 = vld [vmem:[%s4641_s5 + $0x60] sm:$0xff]  }
 0x2c0   :  { %2297 = vmatpush1.bf16.msra.mxu1 %v3687_v63  ;;  %v3720_v63 = vld [vmem:[%s4641_s5 + $0x68] sm:$0xff]  }
 0x2c1   :  { %2298 = vmatprep.subr.bf16.mxu1 %v3692_v54 }
 0x2c3   :  { %3076 = vmatmul.mubr.msk.bf16.gmra.mrb[52].mxu1 %vm1590_vm3, %v4407_v25  ;;  %v1494_v25 = vld [vmem:[#allocation5 + $0x250] sm:$0xff] }
 0x2c4   :  { %2299 = vmatpush1.bf16.msra.mxu1 %v3690_v28  ;;  %2170 = vmatprep.mubr.bf16.mxu1 %v4648_v32  ;;  %v3095_v30 = vcombine.high %v1494_v25, %v1494_v25  ;;  %v3094_v1 = vcombine.low %v1494_v25, %v1494_v25  ;;  %v3721_v28 = vld [vmem:[%s4641_s5 + $0x70] sm:$0xff]   ;;  %v3726_v25 = vld [vmem:[%s4641_s5 + $0x98] sm:$0xff]  }
 0x2c5   :  { %2300 = vmatprep.subr.bf16.mxu1 %v3695_v14 }
 0x2c8   :  { %2301 = vmatpush1.bf16.msra.mxu1 %v3693_v39  ;;  %v3722_v39 = vld [vmem:[%s4641_s5 + $0x78] sm:$0xff]  }
 0x2c9   :  { %2302 = vmatprep.subr.bf16.mxu1 %v3698_v15 }
 0x2cb   :  { %3077 = vmatmul.mubr.msk.bf16.gmra.mrb[56].mxu1 %vm1590_vm3, %v4424_v52  ;;  %v2289_v52 = vsel %vm1603_vm2, %v3094_v1, 0  ;;  %v3727_v1 = vld [vmem:[%s4643_s7] sm:$0xff]  }
 0x2cc   :  { %2303 = vmatpush1.bf16.msra.mxu1 %v3696_v35  ;;  %2180 = vmatprep.mubr.bf16.mxu1 %v4648_v32  ;;  %v3723_v35 = vld [vmem:[%s4641_s5 + $0x80] sm:$0xff]  }
 0x2cd   :  { %2304 = vmatprep.subr.bf16.mxu1 %v3701_v24  ;;  %v3724_v24 = vld [vmem:[%s4641_s5 + $0x88] sm:$0xff]  }
 0x2d0   :  { %2305 = vmatpush1.bf16.msra.mxu1 %v3699_v16  ;;  %v3725_v16 = vld [vmem:[%s4641_s5 + $0x90] sm:$0xff]  }
 0x2d1   :  { %2306 = vmatprep.subr.bf16.mxu1 %v3704_v17 }
 0x2d3   :  { %3078 = vmatmul.mubr.msk.bf16.gmra.mrb[60].mxu1 %vm1590_vm3, %v4444_v42 }
 0x2d4   :  { %2307 = vmatpush1.bf16.msra.mxu1 %v3702_v29  ;;  %2326 = vmatprep.mubr.bf16.mxu1 %v4648_v32 }
 0x2d5   :  { %3096 = vmatprep.subr.msk.bf16.mxu1 %vm1603_vm2, %v3095_v30 }
 0x2d8   :  { %2309 = vmatpush1.bf16.msra.mxu1 %v2289_v52  ;;  %v3728_v52 = vld [vmem:[%s4643_s7 + $0x8] sm:$0xff]  }
 0x2d9   :  { %3230 = vmatprep.subr.bf16.mxu1 %v3812_v2 }
 0x2db   :  { %3097 = vmatmul.mubr.msk.bf16.vlgmr.msra.gmra.mrb[48].mxu1 %vm1590_vm3, %v4398_v23  ;;  %v3709_v23 = vld [vmem:[%s4641_s5 + $0x38] sm:$0xff]  }
 0x2dc   :  { %2336 = vmatprep.mubr.bf16.mxu1 %v4648_v32  ;;  %3231 = vmatpush3.bf16.msra.mxu1 %v3707_v34  ;;  %v3729_v34 = vld [vmem:[%s4643_s7 + $0x10] sm:$0xff]  }
 0x2dd   :  { %3232 = vmatprep.subr.bf16.mxu1 %v3812_v2 }
 0x2e0   :  { %3233 = vmatpush3.bf16.msra.mxu1 %v3708_v31  ;;  %v3730_v31 = vld [vmem:[%s4643_s7 + $0x18] ss:$0 sps:$4 sm:$0x11]  }
 0x2e1   :  { %3234 = vmatprep.subr.bf16.mxu1 %v3812_v2 }
 0x2e3   :  { %3098 = vmatmul.mubr.msk.bf16.gmra.mrb[52].mxu1 %vm1590_vm3, %v4417_v33  ;;  %v3710_v33 = vld [vmem:[%s4641_s5 + $0x40] sm:$0xff]  }
 0x2e4   :  { %2346 = vmatprep.mubr.bf16.mxu1 %v4648_v32  ;;  %3235 = vmatpush3.bf16.msra.mxu1 %v3709_v23  ;;  %v2803_v23 = vsel %vm2801_vm6, %v3730_v31, 0 }
 0x2e5   :  { %3236 = vmatprep.subr.bf16.mxu1 %v3812_v2 }
 0x2e8   :  { %3237 = vmatpush3.bf16.msra.mxu1 %v3710_v33 }
 0x2e9   :  { %3238 = vmatprep.subr.bf16.mxu1 %v3812_v2 }
 0x2eb   :  { %3099 = vmatmul.mubr.msk.bf16.gmra.mrb[56].mxu1 %vm1590_vm3, %v4434_v55 }
 0x2ec   :  { %2356 = vmatprep.mubr.bf16.mxu1 %v4648_v32  ;;  %v3711_v32 = vld [vmem:[%s4641_s5 + $0x48] sm:$0xff]  }
 0x2ed   :  { %3239 = vmatpush3.bf16.msra.mxu1 %v3711_v32 }
 0x2ee   :  { %3244 = vmatprep.subr.bf16.mxu1 %v3812_v2 }
 0x2f3   :  { %3100 = vmatmul.mubr.msk.bf16.gmra.mrb[60].mxu1 %vm1590_vm3, %v4450_v59  ;;  %v4525_v59 = vld [vmem:[%s4640_s4] ss:$0 sm:$0xff] }
 0x2f4   :  { %3240 = vmatprep.mubr.msk.bf16.mxu1 %vm3813_vm4, %v3812_v2 }
 0x3ae   :  { %v2328_v55 = vpop.f32.mrb[48].mxu1 }
 0x3af   :  { %v2330_v50 = vpop.f32.mrb[49].mxu1 }
 0x3b0   :  { %v2332_v56 = vpop.f32.mrb[50].mxu1 }
 0x3b1   :  { %v2383_v18 = vmax.f32 %v2328_v55, %v2332_v56  ;;  %v2334_v4 = vpop.f32.mrb[51].mxu1 }
 0x3b2   :  { %v2387_v5 = vmax.f32 %v2330_v50, %v2334_v4 }
 0x3b4   :  { %v2391_v42 = vmax.f32 %v2383_v18, %v2387_v5 }
 0x3b6   :  { %v2338_v0 = vpop.f32.mrb[52].mxu1  ;;  %v2402_v12 = vadd.f32 %v4525_v59, %v2391_v42 }
 0x3b7   :  { %v2340_v19 = vpop.f32.mrb[53].mxu1 }
 0x3b8   :  { %v2342_v20 = vpop.f32.mrb[54].mxu1  ;;  %v2406_v13 = vmax.f32 %v2402_v12, 0.0 }
 0x3b9   :  { %v2384_v22 = vmax.f32 %v2338_v0, %v2342_v20  ;;  %v2344_v43 = vpop.f32.mrb[55].mxu1 }
 0x3ba   :  { %v2388_v57 = vmax.f32 %v2340_v19, %v2344_v43  ;;  %v2410_v26 = vpack.c.bf16 %v2406_v13, %v2406_v13 }
 0x3bc   :  { %v2392_v58 = vmax.f32 %v2384_v22, %v2388_v57  ;;  %v3156_v57 = vld [vmem:[%s4642_s6] ss:$0 sm:$0xff]  ;;  %s3814_s6 = smov [#allocation7]  }
 0x3bd   :  { %s2862_s2 = sshll.u32 %s3814_s6, 4  ;;  %s2863_s2 = int_to_ptr.vmem [resolvable:$true] %s2862_s2 }
 0x3be   :  { %v2403_v45 = vadd.f32 %v4525_v59, %v2392_v58  ;;  %v2348_v47 = vpop.f32.mrb[56].mxu1  ;;  %p3784_p3 = scmp.lt.s32.totalorder %s2863_s2, %s2863_s2 }
 0x3bf   :  { %v2350_v6 = vpop.f32.mrb[57].mxu1 }
 0x3c0   :  { %v2407_v27 = vmax.f32 %v2403_v45, 0.0  ;;  %v2352_v40 = vpop.f32.mrb[58].mxu1 }
 0x3c1   :  { %v2385_v41 = vmax.f32 %v2348_v47, %v2352_v40  ;;  %v2354_v44 = vpop.f32.mrb[59].mxu1 }
 0x3c2   :  { %v2411_v46 = vpack.c.bf16 %v2407_v27, %v2407_v27  ;;  %v2389_v8 = vmax.f32 %v2350_v6, %v2354_v44 }
 0x3c4   :  { %v2393_v49 = vmax.f32 %v2385_v41, %v2389_v8  ;;  %3241 = vmatmul.mubr.msk.bf16.vlgmr.msra.gmra.mrb[64].mxu1 %vm2487_vm5, %v2411_v46  ;;  %v3157_v41 = vld [vmem:[%s4644_s8] ss:$0 sm:$0xff]  ;;  %s3779_s8 = scalar_lea.vmem %s2863_s2, 128 }
 0x3c5   :  { %3245 = vmatpush3.bf16.msra.mxu1 %v3712_v7  ;;  %3254 = vmatprep.mubr.msk.bf16.mxu1 %vm3813_vm4, %v3812_v2  ;;  %p3780_p2 = scmp.ne.s32.totalorder %s2863_s2, %s3779_s8  ;;  %p3785_p4 = scmp.lt.s32.totalorder %s3779_s8, %s3779_s8 }
 0x3c6   :  { %v2358_v9 = vpop.f32.mrb[60].mxu1  ;;  %3246 = vmatprep.subr.bf16.mxu1 %v3812_v2  ;;  %v2404_v54 = vadd.f32 %v4525_v59, %v2393_v49 }
 0x3c7   :  { %v2360_v60 = vpop.f32.mrb[61].mxu1  ;;  %p3786_p5 = por %p3785_p4, %p3784_p3 }
 0x3c8   :  { %v2362_v51 = vpop.f32.mrb[62].mxu1  ;;  %v2408_v14 = vmax.f32 %v2404_v54, 0.0 }
 0x3c9   :  { %v2386_v3 = vmax.f32 %v2358_v9, %v2362_v51  ;;  %3247 = vmatpush3.bf16.msra.mxu1 %v3713_v48  ;;  %v2364_v21 = vpop.f32.mrb[63].mxu1  ;;  %p3787_p6 = pnand %p3786_p5, %p3780_p2 }
 0x3ca   :  { %v2390_v10 = vmax.f32 %v2360_v60, %v2364_v21  ;;  %3248 = vmatprep.subr.bf16.mxu1 %v3812_v2  ;;  %v2412_v15 = vpack.c.bf16 %v2408_v14, %v2408_v14 }
 0x3cc   :  { %v2394_v61 = vmax.f32 %v2386_v3, %v2390_v10 }
 0x3cd   :  { %3249 = vmatpush3.bf16.msra.mxu1 %v3714_v36 }
 0x3ce   :  { %3250 = vmatprep.subr.bf16.mxu1 %v3812_v2  ;;  %v2405_v17 = vadd.f32 %v4525_v59, %v2394_v61 }
 0x3d0   :  { %v2409_v29 = vmax.f32 %v2405_v17, 0.0 }
 0x3d1   :  { %3251 = vmatpush3.bf16.msra.mxu1 %v3715_v11 }
 0x3d2   :  { %3252 = vmatprep.subr.bf16.mxu1 %v3812_v2  ;;  %v2413_v30 = vpack.c.bf16 %v2409_v29, %v2409_v29 }
 0x3d5   :  { %3253 = vmatpush3.bf16.msra.mxu1 %v3716_v37 }
 0x3d6   :  { %3258 = vmatprep.subr.bf16.mxu1 %v3812_v2 }
 0x3d8   :  { %3255 = vmatmul.mubr.msk.bf16.vlgmr.msra.gmra.mrb[68].mxu1 %vm2487_vm5, %v2410_v26 }
 0x3d9   :  { %3259 = vmatpush3.bf16.msra.mxu1 %v3717_v53  ;;  %3268 = vmatprep.mubr.msk.bf16.mxu1 %vm3813_vm4, %v3812_v2 }
 0x3da   :  { %3260 = vmatprep.subr.bf16.mxu1 %v3812_v2 }
 0x3dd   :  { %3261 = vmatpush3.bf16.msra.mxu1 %v3718_v62 }
 0x3de   :  { %3262 = vmatprep.subr.bf16.mxu1 %v3812_v2 }
 0x3e1   :  { %3263 = vmatpush3.bf16.msra.mxu1 %v3719_v38 }
 0x3e2   :  { %3264 = vmatprep.subr.bf16.mxu1 %v3812_v2 }
 0x3e5   :  { %3265 = vmatpush3.bf16.msra.mxu1 %v3720_v63 }
 0x3e6   :  { %3266 = vmatprep.subr.bf16.mxu1 %v3812_v2 }
 0x3e9   :  { %3267 = vmatpush3.bf16.msra.mxu1 %v3721_v28 }
 0x3ea   :  { %3272 = vmatprep.subr.bf16.mxu1 %v3812_v2 }
 0x3ec   :  { %3269 = vmatmul.mubr.msk.bf16.vlgmr.msra.gmra.mrb[72].mxu1 %vm2487_vm5, %v2412_v15 }
 0x3ed   :  { %3273 = vmatpush3.bf16.msra.mxu1 %v3722_v39  ;;  %3282 = vmatprep.mubr.msk.bf16.mxu1 %vm3813_vm4, %v3812_v2 }
 0x3ee   :  { %3274 = vmatprep.subr.bf16.mxu1 %v3812_v2 }
 0x3f1   :  { %3275 = vmatpush3.bf16.msra.mxu1 %v3723_v35 }
 0x3f2   :  { %3276 = vmatprep.subr.bf16.mxu1 %v3812_v2 }
 0x3f5   :  { %3277 = vmatpush3.bf16.msra.mxu1 %v3724_v24 }
 0x3f6   :  { %3278 = vmatprep.subr.bf16.mxu1 %v3812_v2 }
 0x3f9   :  { %3279 = vmatpush3.bf16.msra.mxu1 %v3725_v16 }
 0x3fa   :  { %3280 = vmatprep.subr.bf16.mxu1 %v3812_v2 }
 0x3fd   :  { %3281 = vmatpush3.bf16.msra.mxu1 %v3726_v25 }
 0x3fe   :  { %3286 = vmatprep.subr.bf16.mxu1 %v3812_v2 }
 0x400   :  { %3283 = vmatmul.mubr.msk.bf16.vlgmr.msra.gmra.mrb[76].mxu1 %vm2487_vm5, %v2413_v30 }
 0x401   :  { %3294 = vmatprep.mubr.msk.bf16.mxu1 %vm3813_vm4, %v3812_v2  ;;  %3287 = vmatpush3.bf16.msra.mxu1 %v3727_v1 }
 0x402   :  { %3288 = vmatprep.subr.bf16.mxu1 %v3812_v2 }
 0x405   :  { %3289 = vmatpush3.bf16.msra.mxu1 %v3728_v52 }
 0x406   :  { %3290 = vmatprep.subr.bf16.mxu1 %v3812_v2 }
 0x409   :  { %3291 = vmatpush3.bf16.msra.mxu1 %v3729_v34 }
 0x40a   :  { %3292 = vmatprep.subr.bf16.mxu1 %v3812_v2 }
 0x40d   :  { %3293 = vmatpush3.bf16.msra.mxu1 %v2803_v23 }
 0x497   :  { %v2525_v33 = vpop.f32.mrb[64].mxu1 }
 0x498   :  { %v3242_v32 = vpop.f32.mrb[65].mxu1 }
 0x499   :  { %v2528_v55 = vpop.f32.mrb[66].mxu1 }
 0x49a   :  { %v3243_v50 = vpop.f32.mrb[67].mxu1 }
 0x4ab   :  { %v2598_v56 = vpop.f32.mrb[68].mxu1 }
 0x4ac   :  { %v2599_v18 = vadd.f32 %v2598_v56, %v2525_v33  ;;  %v3256_v4 = vpop.f32.mrb[69].mxu1 }
 0x4ad   :  { %v2601_v5 = vpop.f32.mrb[70].mxu1 }
 0x4ae   :  { %v3257_v42 = vpop.f32.mrb[71].mxu1 }
 0x4bf   :  { %v2671_v0 = vpop.f32.mrb[72].mxu1 }
 0x4c0   :  { %v2677_v19 = vadd.f32 %v2671_v0, %v2599_v18  ;;  %v3270_v20 = vpop.f32.mrb[73].mxu1 }
 0x4c1   :  { %v2674_v2 = vpop.f32.mrb[74].mxu1 }
 0x4c2   :  { %v3271_v22 = vpop.f32.mrb[75].mxu1 }
 0x4d3   :  { %v2745_v43 = vpop.f32.mrb[76].mxu1 }
 0x4d4   :  { %v2751_v58 = vadd.f32 %v2745_v43, %v2677_v19  ;;  %v3284_v59 = vpop.f32.mrb[77].mxu1 }
 0x4d5   :  { %v2748_v45 = vpop.f32.mrb[78].mxu1 }
 0x4d6   :  { %v2759_v47 = vadd.f32 %v3156_v57, %v2751_v58  ;;  %v3285_v6 = vpop.f32.mrb[79].mxu1 }
 0x4d8   :  { %v2760_v27 = vmax.f32 %v2759_v47, 0.0 }
 0x4da   :  { %v2761_v40 = vpack.c.bf16 %v2760_v27, %v2760_v27 }
 0x4dc   :  { %3295 = vmatmul.mubr.msk.bf16.vlgmr.msra.gmra.mrb[80].mxu1 %vm2797_vm7, %v2761_v40 }
 0x5af   :  { %v2839_v44 = vpop.f32.mrb[80].mxu1 }
 0x5b0   :  { %v2840_v7 = vadd.f32 %v3157_v41, %v2839_v44  ;;  %v3296_v46 = vpop.f32.mrb[81].mxu1 }
 0x5b1   :  { %v2842_v8 = vpop.f32.mrb[82].mxu1 }
 0x5b2   :  { %2845 = vmax.xlane.f32.xlu0 %v2840_v7  ;;  %v3297_v49 = vpop.f32.mrb[83].mxu1 }
 0x63f   :  { %v2846_v48 = vpop.xlane.xlu0 %2845 }
 0x640   :  { %v2847_v9 = vsub.f32 %v2840_v7, %v2846_v48 }
 0x642   :  { %v2848_v60 = vmul.f32 1.442695, %v2847_v9 }
 0x644   :  { %3731 = vpow2.f32 %v2848_v60 }
 0x64e   :  { %v3732_v51 = vpop.eup %3731 }
 0x64f   :  { %2850 = vadd.xlane.f32.xlu0 %v3732_v51 }
 0x6dc   :  { %v2851_v3 = vpop.xlane.xlu0 %2850 }
 0x6dd   :  { %3733 = vlog2.f32 %v2851_v3 }
 0x6e7   :  { %v3734_v21 = vpop.eup %3733 }
 0x6e8   :  { %v2853_v36 = vmul.f32 0.6931472, %v3734_v21 }
 0x6ea   :  { %v2854_v10 = vsub.f32 %v2847_v9, %v2853_v36 }
 0x6ec   :  { %2855 = vst [vmem:[#allocation7] sm:$0xff] %v2854_v10 }
 0x6ed   :  { %3790 = shalt.err (!%p3787_p6)
}
 0x6ee   :  { %s3791_s25 = scalar_lea.hbm %s4645_s9, 128 }
 0x6ef   :  { %p3792_p7 = scmp.ne.s32.totalorder %s4645_s9, %s3791_s25  ;;  %p3795_p8 = scmp.lt.u32.totalorder %s3791_s25, %s4645_s9 }
 0x6f1   :  { %p3797_p9 = pnand %p3795_p8, %p3792_p7 }
 0x6f3   :  { %3800 = shalt.err (!%p3797_p9)
}
 0x6f4   :  { %2865 = dma.vmem_to_hbm [thread:$0]  %s2863_s2, 128, %s4645_s9, [#allocation4]  }
 0x6f5   :  { %3805 = dma.done.wait [#allocation4], 128  }
 0x6f6   :  { %3806 = vsyncadd [#allocation4], 4294967168 }
 0x6f7   :  { %2869 = vsyncpa [#allocation3], 1 }
 0x6f8   :  { %2870 = vsyncpa [#allocation6], 1 }
 0x6f9   :  { %2871 = vsyncpa [#allocation4], 1 }

</bundles_post_ra>
